<compile_context>
chip_gen: v7x
topology: tpu7x:2x2x1
jax: 0.10.0
libtpu: 0.0.40
codegen_flags: <defaults>
</compile_context>

<pallas_src>
import functools

import jax
import jax.numpy as jnp
import numpy as np
from jax.experimental import pallas as pl
from jax.experimental.pallas import tpu as pltpu


def _csc_kernel(x_ref, w0_ref, t0_ref, w1_ref, t1_ref, *rest,
                H, W, pad, wl, shift_ranges, shifts, Ce, Cout,
                has_downsample):
    if has_downsample:
        wd_ref, td_ref, o_ref, pad_ref = rest
    else:
        o_ref, pad_ref = rest

    Bt = x_ref.shape[0]
    Cin = x_ref.shape[-1]
    HW = H * W
    Hp = H + 2 * pad
    Wq = pad_ref.shape[2]
    cdt = pad_ref.dtype                       # bf16 MXU staging dtype

    # ---- conv0 (BN scale pre-folded into w0): matmul + shift + ReLU --------
    xin = x_ref[...]
    x2 = xin.reshape(Bt * HW, Cin).astype(cdt)
    h0 = jnp.dot(x2, w0_ref[...], preferred_element_type=jnp.float32)
    h0 = jnp.maximum(h0 + t0_ref[...], 0.0)
    h0_4d = h0.reshape(Bt, H, W, Ce).astype(cdt)

    # ---- stage into the zero-bordered scratch (only if some shift != 0) ----
    needs_pad = any(s != (0, 0) for s in shifts)
    if needs_pad:
        # Border zeroing: top/bottom pad rows (dense full-width stores) plus
        # the single left/right guard columns actually touched by dx = +-1.
        zr = jnp.zeros((Bt, pad, Wq, Ce), cdt)
        pad_ref[:, 0:pad, :, :] = zr
        pad_ref[:, pad + H:Hp, :, :] = zr
        zc = jnp.zeros((Bt, H, pad, Ce), cdt)
        pad_ref[:, pad:pad + H, wl - pad:wl, :] = zc
        pad_ref[:, pad:pad + H, wl + W:wl + W + pad, :] = zc
        # Interior at sublane-aligned W offset `wl` -> unmasked big store.
        pad_ref[:, pad:pad + H, wl:wl + W, :] = h0_4d

    # ---- Shift: channels permuted so each unique shift is one contiguous ---
    # ---- lane-range slab read; zero-shift channels come straight from h0 ---
    parts = []
    for (cs, ce_), (dy, dx) in zip(shift_ranges, shifts):
        if (dy, dx) == (0, 0):
            parts.append(h0_4d[:, :, :, cs:ce_])
        else:
            parts.append(pad_ref[:, pad + dy:pad + dy + H,
                                 wl + dx:wl + dx + W, cs:ce_])
    shifted = parts[0] if len(parts) == 1 else jnp.concatenate(parts, axis=-1)
    shifted = shifted.reshape(Bt * HW, Ce)

    # ---- conv1 (BN scale pre-folded into w1): matmul + shift + ReLU --------
    h1 = jnp.dot(shifted, w1_ref[...], preferred_element_type=jnp.float32)
    h1 = jnp.maximum(h1 + t1_ref[...], 0.0)

    # ---- residual (optional 1x1 downsample conv + folded BN, no ReLU) ------
    if has_downsample:
        res = jnp.dot(x2, wd_ref[...], preferred_element_type=jnp.float32)
        res = res + td_ref[...]
    else:
        res = xin.reshape(Bt * HW, Cout).astype(jnp.float32)

    o_ref[...] = (h1 + res).reshape(Bt, H, W, Cout).astype(o_ref.dtype)


def csc_forward(x, p, *, bt=None, compute_dtype=jnp.bfloat16, out_dtype=None):
    B, H, W, Cin = x.shape
    Ce = p["w0"].shape[1]
    Cout = p["w1"].shape[1]
    pad = p["pad"]
    shifts = p["shifts_unique"]
    shift_ranges = p["shift_ranges"]
    perm = p["perm"]
    has_downsample = p["has_downsample"]
    if not has_downsample:
        assert Cin == Cout, "identity residual requires Cin == Cout"
    out_dtype = x.dtype if out_dtype is None else jnp.dtype(out_dtype)

    # Fold BN scales into the MXU weights (zero runtime cost) and permute the
    # bottleneck channel axis so each unique shift owns a contiguous lane
    # range; then cast the MXU operands to bf16.  x stays in its original
    # dtype (no wrapper-side cast pass); the kernel casts for the matmuls and
    # keeps the identity-residual path at full precision.
    w0 = (p["w0"] * p["s0"])[:, perm].astype(compute_dtype)
    t0 = p["t0"][:, perm]
    w1 = (p["w1"] * p["s1"])[perm, :].astype(compute_dtype)
    t1 = p["t1"]
    inputs = [x, w0, t0, w1, t1]
    if has_downsample:
        inputs += [(p["wd"] * p["sd"]).astype(compute_dtype), p["td"]]

    # Sublane-aligned left offset of the scratch interior (16 for bf16).
    sub = 8 * (4 // jnp.dtype(compute_dtype).itemsize)
    wl = 0 if pad == 0 else ((pad + sub - 1) // sub) * sub
    Hp, Wq = H + 2 * pad, wl + W + pad

    # Batch-tile size: largest divisor of B whose per-step working set fits a
    # conservative VMEM budget (v7x has only 64 MiB per TensorCore) while
    # keeping >= 2 grid steps so the "parallel" batch axis can feed both v7x
    # TensorCores.
    xbytes = jnp.dtype(x.dtype).itemsize
    obytes = jnp.dtype(out_dtype).itemsize
    cbytes = jnp.dtype(compute_dtype).itemsize
    if bt is None:
        budget = 32 * 1024 * 1024

        def step_bytes(b):
            px = b * H * W
            return (2 * px * Cin * xbytes            # double-buffered x blocks
                    + 2 * px * Cout * obytes         # double-buffered out blocks
                    + b * Hp * Wq * Ce * cbytes      # staging scratch
                    + px * (8 * Ce + 8 * Cout))      # f32/bf16 temporaries

        bt = 1
        for c in (32, 16, 8, 4, 2):
            if B % c == 0 and B // c >= min(2, B) and step_bytes(c) <= budget:
                bt = c
                break
    assert B % bt == 0

    kernel = functools.partial(
        _csc_kernel, H=H, W=W, pad=pad, wl=wl, shift_ranges=shift_ranges,
        shifts=shifts, Ce=Ce, Cout=Cout, has_downsample=has_downsample)

    def rep(a):  # whole-array block, replicated across the batch grid
        n = a.ndim
        return pl.BlockSpec(a.shape, lambda b, _n=n: (0,) * _n)

    in_specs = ([pl.BlockSpec((bt, H, W, Cin), lambda b: (b, 0, 0, 0))]
                + [rep(a) for a in inputs[1:]])

    grid_spec = pltpu.PrefetchScalarGridSpec(
        num_scalar_prefetch=0,
        grid=(B // bt,),
        in_specs=in_specs,
        out_specs=pl.BlockSpec((bt, H, W, Cout), lambda b: (b, 0, 0, 0)),
        scratch_shapes=[pltpu.VMEM((bt, Hp, Wq, Ce), compute_dtype)],
    )

    # VMEM limit: ~3/4 of per-TensorCore capacity (48 MiB on v7x's 64 MiB/TC,
    # 96 MiB on v5e/v6e's 128 MiB), capped at 100 MiB.
    try:
        cap = int(getattr(pltpu.get_tpu_info(), "vmem_capacity_bytes", 0)) \
            or (64 << 20)
    except Exception:
        cap = 64 << 20
    vmem_limit = min(cap * 3 // 4, 100 * 1024 * 1024)

    flops = 2 * B * H * W * (
        Cin * Ce + Ce * Cout + (Cin * Cout if has_downsample else 0))
    bytes_accessed = int(
        x.size * xbytes + B * H * W * Cout * obytes
        + sum(int(a.size) * jnp.dtype(a.dtype).itemsize for a in inputs[1:]))

    return pl.pallas_call(
        kernel,
        out_shape=jax.ShapeDtypeStruct((B, H, W, Cout), out_dtype),
        grid_spec=grid_spec,
        compiler_params=pltpu.CompilerParams(
            dimension_semantics=("parallel",),
            vmem_limit_bytes=vmem_limit),
        cost_estimate=pl.CostEstimate(
            flops=flops, transcendentals=0, bytes_accessed=bytes_accessed),
    )(*inputs)


def build_csc_params(key, inplanes, planes, expansion=4, ksize=3, stride=1):
    # TODO(synk): stride != 1 (strided 1x1 convs / strided downsample) not implemented.
    assert stride == 1
    Ce = inplanes * expansion
    dk2 = ksize * ksize
    eps = 1e-5
    ks = jax.random.split(key, 10)

    def bn_params(k, c):
        k1, k2, k3, k4 = jax.random.split(k, 4)
        gamma = 1.0 + 0.1 * jax.random.normal(k1, (c,), jnp.float32)
        beta = 0.1 * jax.random.normal(k2, (c,), jnp.float32)
        mean = 0.1 * jax.random.normal(k3, (c,), jnp.float32)
        var = 1.0 + 0.1 * jax.random.uniform(k4, (c,), jnp.float32)
        return gamma, beta, mean, var

    def fold(gamma, beta, mean, var, bias):
        s = gamma / jnp.sqrt(var + eps)
        t = (bias - mean) * s + beta
        return s.reshape(1, -1), t.reshape(1, -1)

    # conv0 + BN
    w0 = 0.2 * jax.random.normal(ks[0], (inplanes, Ce), jnp.float32)
    b0 = 0.1 * jax.random.normal(ks[1], (Ce,), jnp.float32)
    bn0 = bn_params(ks[2], Ce)
    s0, t0 = fold(*bn0, b0)

    # conv1 + BN
    w1 = 0.2 * jax.random.normal(ks[3], (Ce, planes), jnp.float32)
    b1 = 0.1 * jax.random.normal(ks[4], (planes,), jnp.float32)
    bn1 = bn_params(ks[5], planes)
    s1, t1 = fold(*bn1, b1)

    # Shift configuration (mirrors Shift.__init__, dilation=1)
    groups = Ce // dk2
    padding = (ksize - 1) // 2
    rnd = np.asarray(jax.random.randint(
        ks[6], (groups, 2), -(ksize - 1) // 2, (ksize + 1) // 2))
    all_shifts = [(int(rnd[i, 0]), int(rnd[i, 1])) for i in range(groups)]
    all_shifts.append((0, 0))  # last group: zero shift

    group_ranges, shifts = [], []
    for i in range(groups + 1):
        start, end = i * dk2, min(Ce, (i + 1) * dk2)
        if end > start:                       # last group may be partial
            group_ranges.append((start, end))
            shifts.append(all_shifts[i])

    # Channel permutation: group channels by UNIQUE shift so the kernel's
    # shift stage becomes a handful of contiguous lane-slice reads (no masks,
    # no multiply/add merge).  w0 columns / t0 / w1 rows get permuted to match.
    chans_by_shift = {}
    for (start, end), s in zip(group_ranges, shifts):
        chans_by_shift.setdefault(s, []).extend(range(start, end))
    shifts_unique = tuple(chans_by_shift.keys())
    perm = np.concatenate(
        [np.asarray(chans_by_shift[s], np.int32) for s in shifts_unique])
    shift_ranges, off = [], 0
    for s in shifts_unique:
        n = len(chans_by_shift[s])
        shift_ranges.append((off, off + n))
        off += n
    shift_ranges = tuple(shift_ranges)

    # optional downsample (1x1 conv, no bias) + BN
    has_downsample = (stride != 1) or (inplanes != planes)
    if has_downsample:
        wd = 0.2 * jax.random.normal(ks[7], (inplanes, planes), jnp.float32)
        bnd = bn_params(ks[8], planes)
        sd, td = fold(*bnd, jnp.zeros((planes,), jnp.float32))
    else:
        wd, sd, td, bnd = None, None, None, None

    return dict(w0=w0, s0=s0, t0=t0, w1=w1, s1=s1, t1=t1,
                wd=wd, sd=sd, td=td,
                pad=padding,
                shifts=tuple(shifts), group_ranges=tuple(group_ranges),
                shifts_unique=shifts_unique, shift_ranges=shift_ranges,
                perm=perm,
                has_downsample=has_downsample,
                raw=dict(b0=b0, bn0=bn0, b1=b1, bn1=bn1, bnd=bnd))


def csc_reference(x, p):
    """Pure-JAX reference mirroring the PyTorch forward (eval-mode BN)."""
    eps = 1e-5
    B, H, W, _ = x.shape
    raw = p["raw"]

    def bn(z, bnp):
        gamma, beta, mean, var = bnp
        return (z - mean) / jnp.sqrt(var + eps) * gamma + beta

    h = jnp.einsum('bhwc,cd->bhwd', x, p["w0"]) + raw["b0"]
    h = jax.nn.relu(bn(h, raw["bn0"]))

    pad = p["pad"]
    hp = jnp.pad(h, ((0, 0), (pad, pad), (pad, pad), (0, 0)))
    parts = []
    for (start, end), (dy, dx) in zip(p["group_ranges"], p["shifts"]):
        parts.append(
            hp[:, pad + dy:pad + dy + H, pad + dx:pad + dx + W, start:end])
    hs = jnp.concatenate(parts, axis=-1)

    h1 = jnp.einsum('bhwc,cd->bhwd', hs, p["w1"]) + raw["b1"]
    h1 = jax.nn.relu(bn(h1, raw["bn1"]))

    if p["has_downsample"]:
        res = bn(jnp.einsum('bhwc,cd->bhwd', x, p["wd"]), raw["bnd"])
    else:
        res = x
    return h1 + res


if __name__ == "__main__":
    key = jax.random.PRNGKey(0)
    kx, kp = jax.random.split(key)

    B, H, W = 4, 16, 16
    inplanes, planes = 4, 8   # expansion=4 -> Ce=16: one full group + partial last group
    x = jax.random.normal(kx, (B, H, W, inplanes), jnp.float32)

    params = build_csc_params(kp, inplanes, planes, expansion=4, ksize=3,
                              stride=1)

    # Auto bt picks 2 here -> two images per grid step AND two grid steps:
    # exercises batch folding plus the per-step scratch-border invariant
    # under "parallel" semantics.
    out = jax.block_until_ready(csc_forward(x, params))

    ref = csc_reference(x, params)
    assert out.shape == ref.shape == (B, H, W, planes)
    max_err = float(jnp.max(jnp.abs(out - ref)))
    # bf16 MXU inputs (BN scales folded into weights) with f32 accumulation.
    assert jnp.allclose(out, ref, atol=2e-2, rtol=2e-2), max_err

    print("KERNEL_OK")
</pallas_src>

<mosaic_0001>
module attributes {stable_mosaic.version = 11 : i64} {
  func.func @_csc_kernel(%arg0: i32, %arg1: memref<2x16x16x4xf32, #tpu.memory_space<vmem>>, %arg2: memref<4x16xbf16, #tpu.memory_space<vmem>>, %arg3: memref<1x16xf32, #tpu.memory_space<vmem>>, %arg4: memref<16x8xbf16, #tpu.memory_space<vmem>>, %arg5: memref<1x8xf32, #tpu.memory_space<vmem>>, %arg6: memref<4x8xbf16, #tpu.memory_space<vmem>>, %arg7: memref<1x8xf32, #tpu.memory_space<vmem>>, %arg8: memref<2x16x16x8xf32, #tpu.memory_space<vmem>>, %arg9: memref<2x18x33x16xbf16, #tpu.memory_space<vmem>>) attributes {dimension_semantics = [#tpu.dimension_semantics<parallel>], iteration_bounds = array<i64: 2>, scalar_prefetch = 0 : i64, scratch_operands = 1 : i64, tpu.core_type = #tpu.core_type<tc>, window_params = [{transform_indices = @transform_0, window_bounds = array<i64: 2, 16, 16, 4>}, {pipeline_mode = #tpu.pipeline_mode<synchronous>, transform_indices = @transform_1, window_bounds = array<i64: 4, 16>}, {pipeline_mode = #tpu.pipeline_mode<synchronous>, transform_indices = @transform_2, window_bounds = array<i64: 1, 16>}, {pipeline_mode = #tpu.pipeline_mode<synchronous>, transform_indices = @transform_3, window_bounds = array<i64: 16, 8>}, {pipeline_mode = #tpu.pipeline_mode<synchronous>, transform_indices = @transform_4, window_bounds = array<i64: 1, 8>}, {pipeline_mode = #tpu.pipeline_mode<synchronous>, transform_indices = @transform_5, window_bounds = array<i64: 4, 8>}, {pipeline_mode = #tpu.pipeline_mode<synchronous>, transform_indices = @transform_6, window_bounds = array<i64: 1, 8>}, {transform_indices = @transform_7, window_bounds = array<i64: 2, 16, 16, 8>}]} {
    %c0 = arith.constant 0 : index
    %c0_0 = arith.constant 0 : index
    %c0_1 = arith.constant 0 : index
    %c0_2 = arith.constant 0 : index
    %0 = vector.load %arg1[%c0, %c0_0, %c0_1, %c0_2] : memref<2x16x16x4xf32, #tpu.memory_space<vmem>>, vector<2x16x16x4xf32>
    %1 = vector.shape_cast %0 : vector<2x16x16x4xf32> to vector<512x4xf32>
    %2 = arith.truncf %1 : vector<512x4xf32> to vector<512x4xbf16>
    %c0_3 = arith.constant 0 : index
    %c0_4 = arith.constant 0 : index
    %3 = vector.load %arg2[%c0_3, %c0_4] : memref<4x16xbf16, #tpu.memory_space<vmem>>, vector<4x16xbf16>
    %cst = arith.constant dense<0.000000e+00> : vector<512x16xf32>
    %4 = tpu.matmul %2, %3, %cst {dimension_numbers = #tpu.dot_dimension_numbers<[1], [0], [0], [1], [0, 0, 1, 1], [], []>} : vector<512x4xbf16>, vector<4x16xbf16>, vector<512x16xf32> -> vector<512x16xf32>
    %c0_5 = arith.constant 0 : index
    %c0_6 = arith.constant 0 : index
    %5 = vector.load %arg3[%c0_5, %c0_6] : memref<1x16xf32, #tpu.memory_space<vmem>>, vector<1x16xf32>
    %6 = vector.broadcast %5 : vector<1x16xf32> to vector<512x16xf32>
    %7 = arith.addf %4, %6 : vector<512x16xf32>
    %cst_7 = arith.constant 0.000000e+00 : f32
    %8 = vector.broadcast %cst_7 : f32 to vector<512x16xf32>
    %9 = arith.maximumf %7, %8 : vector<512x16xf32>
    %10 = vector.shape_cast %9 : vector<512x16xf32> to vector<2x16x16x16xf32>
    %11 = arith.truncf %10 : vector<2x16x16x16xf32> to vector<2x16x16x16xbf16>
    %12 = vector.shape_cast %11 : vector<2x16x16x16xbf16> to vector<512x16xbf16>
    %c0_8 = arith.constant 0 : index
    %c0_9 = arith.constant 0 : index
    %13 = vector.load %arg4[%c0_8, %c0_9] : memref<16x8xbf16, #tpu.memory_space<vmem>>, vector<16x8xbf16>
    %cst_10 = arith.constant dense<0.000000e+00> : vector<512x8xf32>
    %14 = tpu.matmul %12, %13, %cst_10 {dimension_numbers = #tpu.dot_dimension_numbers<[1], [0], [0], [1], [0, 0, 1, 1], [], []>} : vector<512x16xbf16>, vector<16x8xbf16>, vector<512x8xf32> -> vector<512x8xf32>
    %c0_11 = arith.constant 0 : index
    %c0_12 = arith.constant 0 : index
    %15 = vector.load %arg5[%c0_11, %c0_12] : memref<1x8xf32, #tpu.memory_space<vmem>>, vector<1x8xf32>
    %16 = vector.broadcast %15 : vector<1x8xf32> to vector<512x8xf32>
    %17 = arith.addf %14, %16 : vector<512x8xf32>
    %cst_13 = arith.constant 0.000000e+00 : f32
    %18 = vector.broadcast %cst_13 : f32 to vector<512x8xf32>
    %19 = arith.maximumf %17, %18 : vector<512x8xf32>
    %c0_14 = arith.constant 0 : index
    %c0_15 = arith.constant 0 : index
    %20 = vector.load %arg6[%c0_14, %c0_15] : memref<4x8xbf16, #tpu.memory_space<vmem>>, vector<4x8xbf16>
    %cst_16 = arith.constant dense<0.000000e+00> : vector<512x8xf32>
    %21 = tpu.matmul %2, %20, %cst_16 {dimension_numbers = #tpu.dot_dimension_numbers<[1], [0], [0], [1], [0, 0, 1, 1], [], []>} : vector<512x4xbf16>, vector<4x8xbf16>, vector<512x8xf32> -> vector<512x8xf32>
    %c0_17 = arith.constant 0 : index
    %c0_18 = arith.constant 0 : index
    %22 = vector.load %arg7[%c0_17, %c0_18] : memref<1x8xf32, #tpu.memory_space<vmem>>, vector<1x8xf32>
    %23 = vector.broadcast %22 : vector<1x8xf32> to vector<512x8xf32>
    %24 = arith.addf %21, %23 : vector<512x8xf32>
    %25 = arith.addf %19, %24 : vector<512x8xf32>
    %26 = vector.shape_cast %25 : vector<512x8xf32> to vector<2x16x16x8xf32>
    %c0_19 = arith.constant 0 : index
    %c0_20 = arith.constant 0 : index
    %c0_21 = arith.constant 0 : index
    %c0_22 = arith.constant 0 : index
    %27 = vector.load %arg8[%c0_19, %c0_20, %c0_21, %c0_22] : memref<2x16x16x8xf32, #tpu.memory_space<vmem>>, vector<2x16x16x8xf32>
    tpu.vector_store %arg8[%c0_19, %c0_20, %c0_21, %c0_22], %26 {strides = array<i32>} : memref<2x16x16x8xf32, #tpu.memory_space<vmem>>, vector<2x16x16x8xf32>,
    return
  }
  func.func @transform_0(%arg0: i32) -> (i32, i32, i32, i32) {
    %c0_i32 = arith.constant 0 : i32
    %c0_i32_0 = arith.constant 0 : i32
    %c0_i32_1 = arith.constant 0 : i32
    %c0_i32_2 = arith.constant 0 : i32
    return %arg0, %c0_i32, %c0_i32_0, %c0_i32_1 : i32, i32, i32, i32
  }
  func.func @transform_1(%arg0: i32) -> (i32, i32) {
    %c0_i32 = arith.constant 0 : i32
    %c0_i32_0 = arith.constant 0 : i32
    %c0_i32_1 = arith.constant 0 : i32
    return %c0_i32, %c0_i32_0 : i32, i32
  }
  func.func @transform_2(%arg0: i32) -> (i32, i32) {
    %c0_i32 = arith.constant 0 : i32
    %c0_i32_0 = arith.constant 0 : i32
    %c0_i32_1 = arith.constant 0 : i32
    return %c0_i32, %c0_i32_0 : i32, i32
  }
  func.func @transform_3(%arg0: i32) -> (i32, i32) {
    %c0_i32 = arith.constant 0 : i32
    %c0_i32_0 = arith.constant 0 : i32
    %c0_i32_1 = arith.constant 0 : i32
    return %c0_i32, %c0_i32_0 : i32, i32
  }
  func.func @transform_4(%arg0: i32) -> (i32, i32) {
    %c0_i32 = arith.constant 0 : i32
    %c0_i32_0 = arith.constant 0 : i32
    %c0_i32_1 = arith.constant 0 : i32
    return %c0_i32, %c0_i32_0 : i32, i32
  }
  func.func @transform_5(%arg0: i32) -> (i32, i32) {
    %c0_i32 = arith.constant 0 : i32
    %c0_i32_0 = arith.constant 0 : i32
    %c0_i32_1 = arith.constant 0 : i32
    return %c0_i32, %c0_i32_0 : i32, i32
  }
  func.func @transform_6(%arg0: i32) -> (i32, i32) {
    %c0_i32 = arith.constant 0 : i32
    %c0_i32_0 = arith.constant 0 : i32
    %c0_i32_1 = arith.constant 0 : i32
    return %c0_i32, %c0_i32_0 : i32, i32
  }
  func.func @transform_7(%arg0: i32) -> (i32, i32, i32, i32) {
    %c0_i32 = arith.constant 0 : i32
    %c0_i32_0 = arith.constant 0 : i32
    %c0_i32_1 = arith.constant 0 : i32
    %c0_i32_2 = arith.constant 0 : i32
    return %arg0, %c0_i32, %c0_i32_0, %c0_i32_1 : i32, i32, i32, i32
  }
}

</mosaic_0001>

<bundles_post_ra>
// kernel: tpu_custom_call.1
= control target key start
LH: loop header
LB: loop body
LE: loop exit
PB: predicated region body
PF: predicated region fallthrough
CT: control target
= control target key end

     0   :  { %s2304_s24 = smov 0   ;;  %s3150_s0 = inlined_call_operand.vmem [shape: f32[4,16,16,4], index: 0, kind: input, shape index: {}]   ;;  %s3151_s1 = inlined_call_operand.vmem [shape: bf16[4,16], index: 1, kind: input, shape index: {}]   ;;  %s3152_s2 = inlined_call_operand.vmem [shape: f32[1,16], index: 2, kind: input, shape index: {}]   ;;  %s3153_s3 = inlined_call_operand.vmem [shape: bf16[16,8], index: 3, kind: input, shape index: {}]   ;;  %s3154_s4 = inlined_call_operand.vmem [shape: f32[1,8], index: 4, kind: input, shape index: {}]   ;;  %s3155_s5 = inlined_call_operand.vmem [shape: bf16[4,8], index: 5, kind: input, shape index: {}]   ;;  %s3156_s6 = inlined_call_operand.vmem [shape: f32[1,8], index: 6, kind: input, shape index: {}]   ;;  %s3157_s7 = inlined_call_operand.vmem [shape: f32[4,16,16,8], index: 7, kind: output, shape index: {}]  }
   0x1 LB: > { %s1830_s25 = sadd.s32 4294967295, %s2262_s24   ;;  %p1834_p0 = scmp.ge.s32.totalorder %s2262_s24, 1  ;;  %s2262_s24 = sphi %s2304_s24, %s17_s24  }
   0x2   : > { %p239_p1 = scmp.lt.s32.totalorder %s2262_s24, 3 }
   0x4   : > { %p240_p2 = pnand %p1834_p0, %p239_p1 }
   0x6   : > { %243 = sbr.rel (%p240_p2) target bundleno = 587 (0x24b), region = 48 }
   0xd   : > { %v384_v0 = vld [vmem:[%s3151_s1] sm:$0x3]  ;;  %vm489_vm0 = vcmask 1041408   ;;  %s1835_s28 = sshll.u32 %s1830_s25, 1  ;;  %vm392_vm1 = vcmask 31744   ;;  %vm893_vm2 = vcmask 130048  }
   0xe   : > { %v2255_v1 = vld [vmem:[%s3153_s3] sm:$0xff]   ;;  %2244 = vmatprep.subr.msk.bf16.mxu0 %vm489_vm0, %v384_v0  ;;  %v491_v2 = vsel %vm489_vm0, %v384_v0, 0  ;;  %p274_p3 = scmp.lt.s32.totalorder %s1835_s28, 3  ;;  %2245 = vmatprep.subr.msk.bf16.mxu1 %vm489_vm0, %v384_v0  ;;  %vm1707_vm3 = vcmask 64512  }
   0xf   : > { %2045 = vmatpush3.bf16.msra.mxu0 %v491_v2  ;;  %2243 = vmatpush3.bf16.msra.mxu1 %v491_v2  ;;  %v1343_v3 = vld [vmem:[%s3155_s5] sm:$0x3] }
  0x10   : > { %s3191_s28 = smov (!%p274_p3, %s1835_s28), 3  ;;  %2110 = vmatprep.subr.bf16.mxu1 %v2255_v1  ;;  %2246 = vmatprep.subr.msk.bf16.mxu0 %vm489_vm0, %v1343_v3  ;;  %v1352_v13 = vsel %vm489_vm0, %v1343_v3, 0 }
  0x11   : > { %s1943_s10 = sshll.u32 %s3191_s28, 8 }
  0x12   : > { %s2333_s13 = scalar_lea.vmem %s3150_s0, %s1943_s10  ;;  %s2832_s22 = scalar_lea.vmem %s3157_s7, %s1943_s10 }
  0x13   : > { %v288_v4 = vld [vmem:[%s2333_s13] sm:$0xff]  ;;  %v289_v5 = vld [vmem:[%s2333_s13 + $0x8] sm:$0xff]  ;;  %v290_v6 = vld [vmem:[%s2333_s13 + $0x10] sm:$0xff] }
  0x14   : > { %v2338_v7 = vpack.c.bf16 %v289_v5, %v288_v4  ;;  %v291_v8 = vld [vmem:[%s2333_s13 + $0x18] sm:$0xff]  ;;  %v292_v9 = vld [vmem:[%s2333_s13 + $0x20] sm:$0xff]  ;;  %v293_v10 = vld [vmem:[%s2333_s13 + $0x28] sm:$0xff] }
  0x15   : > { %v2343_v11 = vpack.c.bf16 %v291_v8, %v290_v6  ;;  %v2345_v12 = vpack.c.bf16 %v293_v10, %v292_v9  ;;  %v294_v14 = vld [vmem:[%s2333_s13 + $0x30] sm:$0xff]  ;;  %v295_v15 = vld [vmem:[%s2333_s13 + $0x38] sm:$0xff]  ;;  %v296_v16 = vld [vmem:[%s2333_s13 + $0x40] sm:$0xff] }
  0x16   : > { %2046 = vmatprep.mubr.msk.bf16.mxu0 %vm392_vm1, %v2338_v7  ;;  %v297_v17 = vld [vmem:[%s2333_s13 + $0x48] sm:$0xff]  ;;  %v2358_v18 = vpack.c.bf16 %v295_v15, %v294_v14  ;;  %v320_v20 = vld [vmem:[%s2333_s13 + $0x100] sm:$0xff]  ;;  %v322_v22 = vld [vmem:[%s2333_s13 + $0x110] sm:$0xff] }
  0x17   : > { %2047 = vmatmul.mubr.msk.bf16.vlgmr.msra.gmra.mrb[0].mxu0 %vm392_vm1, %v2343_v11  ;;  %v2360_v19 = vpack.c.bf16 %v297_v17, %v296_v16  ;;  %v321_v21 = vld [vmem:[%s2333_s13 + $0x108] sm:$0xff]  ;;  %v323_v23 = vld [vmem:[%s2333_s13 + $0x118] sm:$0xff]  ;;  %v324_v26 = vld [vmem:[%s2333_s13 + $0x120] sm:$0xff] }
  0x18   : > { %2050 = vmatprep.mubr.msk.bf16.mxu0 %vm392_vm1, %v2345_v12  ;;  %2177 = vmatpush3.bf16.msra.mxu0 %v1352_v13  ;;  %v2368_v24 = vpack.c.bf16 %v321_v21, %v320_v20  ;;  %v2370_v25 = vpack.c.bf16 %v323_v23, %v322_v22  ;;  %v325_v27 = vld [vmem:[%s2333_s13 + $0x128] sm:$0xff]  ;;  %v298_v28 = vld [vmem:[%s2333_s13 + $0x50] sm:$0xff]  ;;  %v299_v29 = vld [vmem:[%s2333_s13 + $0x58] sm:$0xff] }
  0x19   : > { %v2378_v30 = vpack.c.bf16 %v325_v27, %v324_v26  ;;  %v300_v31 = vld [vmem:[%s2333_s13 + $0x60] sm:$0xff]  ;;  %v301_v32 = vld [vmem:[%s2333_s13 + $0x68] sm:$0xff]  ;;  %v2386_v33 = vpack.c.bf16 %v299_v29, %v298_v28  ;;  %v326_v34 = vld [vmem:[%s2333_s13 + $0x130] sm:$0xff] }
  0x1a   : > { %2078 = vmatprep.mubr.msk.bf16.mxu1 %vm392_vm1, %v2368_v24  ;;  %v327_v35 = vld [vmem:[%s2333_s13 + $0x138] sm:$0xff]  ;;  %v2392_v36 = vpack.c.bf16 %v301_v32, %v300_v31  ;;  %v328_v37 = vld [vmem:[%s2333_s13 + $0x140] sm:$0xff]  ;;  %v329_v38 = vld [vmem:[%s2333_s13 + $0x148] sm:$0xff] }
  0x1b   : > { %2079 = vmatmul.mubr.msk.bf16.vlgmr.msra.gmra.mrb[0].mxu1 %vm392_vm1, %v2370_v25  ;;  %v2396_v39 = vpack.c.bf16 %v327_v35, %v326_v34  ;;  %v2400_v40 = vpack.c.bf16 %v329_v38, %v328_v37  ;;  %v302_v41 = vld [vmem:[%s2333_s13 + $0x70] sm:$0xff]  ;;  %v303_v42 = vld [vmem:[%s2333_s13 + $0x78] sm:$0xff]  ;;  %v304_v43 = vld [vmem:[%s2333_s13 + $0x80] sm:$0xff] }
  0x1c   : > { %2082 = vmatprep.mubr.msk.bf16.mxu1 %vm392_vm1, %v2378_v30  ;;  %2111 = vmatpush3.bf16.msra.mxu1 %v2255_v1  ;;  %v305_v44 = vld [vmem:[%s2333_s13 + $0x88] sm:$0xff]  ;;  %v2410_v45 = vpack.c.bf16 %v303_v42, %v302_v41  ;;  %v330_v46 = vld [vmem:[%s2333_s13 + $0x150] sm:$0xff]  ;;  %v331_v47 = vld [vmem:[%s2333_s13 + $0x158] sm:$0xff] }
  0x1d   : > { %v2416_v48 = vpack.c.bf16 %v305_v44, %v304_v43  ;;  %v332_v49 = vld [vmem:[%s2333_s13 + $0x160] sm:$0xff]  ;;  %v333_v50 = vld [vmem:[%s2333_s13 + $0x168] sm:$0xff]  ;;  %v2420_v51 = vpack.c.bf16 %v331_v47, %v330_v46  ;;  %v306_v53 = vld [vmem:[%s2333_s13 + $0x90] sm:$0xff] }
  0x1e   : > { %v2424_v52 = vpack.c.bf16 %v333_v50, %v332_v49  ;;  %v307_v54 = vld [vmem:[%s2333_s13 + $0x98] sm:$0xff]  ;;  %v308_v55 = vld [vmem:[%s2333_s13 + $0xa0] sm:$0xff]  ;;  %v309_v56 = vld [vmem:[%s2333_s13 + $0xa8] sm:$0xff] }
  0x1f   : > { %2051 = vmatmul.mubr.msk.bf16.gmra.mrb[4].mxu0 %vm392_vm1, %v2358_v18  ;;  %v2434_v57 = vpack.c.bf16 %v307_v54, %v306_v53  ;;  %v334_v58 = vld [vmem:[%s2333_s13 + $0x170] sm:$0xff]  ;;  %v335_v59 = vld [vmem:[%s2333_s13 + $0x178] sm:$0xff]  ;;  %v2440_v60 = vpack.c.bf16 %v309_v56, %v308_v55  ;;  %v336_v61 = vld [vmem:[%s2333_s13 + $0x180] sm:$0xff] }
  0x20   : > { %2054 = vmatprep.mubr.msk.bf16.mxu0 %vm392_vm1, %v2360_v19  ;;  %v337_v62 = vld [vmem:[%s2333_s13 + $0x188] sm:$0xff]  ;;  %v2444_v63 = vpack.c.bf16 %v335_v59, %v334_v58  ;;  %v310_v1 = vld [vmem:[%s2333_s13 + $0xb0] sm:$0xff]  ;;  %v311_v2 = vld [vmem:[%s2333_s13 + $0xb8] sm:$0xff] }
  0x21   : > { %v2448_v0 = vpack.c.bf16 %v337_v62, %v336_v61  ;;  %v312_v3 = vld [vmem:[%s2333_s13 + $0xc0] sm:$0xff]  ;;  %v313_v4 = vld [vmem:[%s2333_s13 + $0xc8] sm:$0xff]  ;;  %v363_v5 = vpack.c.bf16 %v311_v2, %v310_v1  ;;  %v338_v6 = vld [vmem:[%s2333_s13 + $0x190] sm:$0xff] }
  0x22   : > { %v339_v8 = vld [vmem:[%s2333_s13 + $0x198] sm:$0xff]  ;;  %v364_v9 = vpack.c.bf16 %v313_v4, %v312_v3  ;;  %v340_v10 = vld [vmem:[%s2333_s13 + $0x1a0] sm:$0xff]  ;;  %v341_v13 = vld [vmem:[%s2333_s13 + $0x1a8] sm:$0xff] }
  0x23   : > { %2083 = vmatmul.mubr.msk.bf16.gmra.mrb[4].mxu1 %vm392_vm1, %v2396_v39  ;;  %v2464_v14 = vpack.c.bf16 %v339_v8, %v338_v6  ;;  %v378_v15 = vpack.c.bf16 %v341_v13, %v340_v10  ;;  %v314_v16 = vld [vmem:[%s2333_s13 + $0xd0] sm:$0xff]  ;;  %v315_v17 = vld [vmem:[%s2333_s13 + $0xd8] sm:$0xff]  ;;  %v316_v20 = vld [vmem:[%s2333_s13 + $0xe0] sm:$0xff] }
  0x24   : > { %2086 = vmatprep.mubr.msk.bf16.mxu1 %vm392_vm1, %v2400_v40  ;;  %v317_v21 = vld [vmem:[%s2333_s13 + $0xe8] sm:$0xff]  ;;  %v365_v22 = vpack.c.bf16 %v315_v17, %v314_v16  ;;  %v342_v23 = vld [vmem:[%s2333_s13 + $0x1b0] sm:$0xff]  ;;  %v343_v26 = vld [vmem:[%s2333_s13 + $0x1b8] sm:$0xff] }
  0x25   : > { %v366_v27 = vpack.c.bf16 %v317_v21, %v316_v20  ;;  %v344_v28 = vld [vmem:[%s2333_s13 + $0x1c0] sm:$0xff]  ;;  %v345_v29 = vld [vmem:[%s2333_s13 + $0x1c8] sm:$0xff]  ;;  %v379_v31 = vpack.c.bf16 %v343_v26, %v342_v23  ;;  %v318_v34 = vld [vmem:[%s2333_s13 + $0xf0] sm:$0xff] }
  0x26   : > { %v380_v32 = vpack.c.bf16 %v345_v29, %v344_v28  ;;  %v319_v35 = vld [vmem:[%s2333_s13 + $0xf8] sm:$0xff]  ;;  %v346_v38 = vld [vmem:[%s2333_s13 + $0x1d0] sm:$0xff]  ;;  %v348_v42 = vld [vmem:[%s2333_s13 + $0x1e0] sm:$0xff] }
  0x27   : > { %2055 = vmatmul.mubr.msk.bf16.gmra.mrb[8].mxu0 %vm392_vm1, %v2386_v33  ;;  %v367_v37 = vpack.c.bf16 %v319_v35, %v318_v34  ;;  %v347_v41 = vld [vmem:[%s2333_s13 + $0x1d8] sm:$0xff]  ;;  %v349_v43 = vld [vmem:[%s2333_s13 + $0x1e8] sm:$0xff]  ;;  %v350_v47 = vld [vmem:[%s2333_s13 + $0x1f0] sm:$0xff] }
  0x28   : > { %2058 = vmatprep.mubr.msk.bf16.mxu0 %vm392_vm1, %v2392_v36  ;;  %v381_v44 = vpack.c.bf16 %v347_v41, %v346_v38  ;;  %v382_v46 = vpack.c.bf16 %v349_v43, %v348_v42  ;;  %v351_v49 = vld [vmem:[%s2333_s13 + $0x1f8] sm:$0xff] }
  0x29   : > { %v383_v50 = vpack.c.bf16 %v351_v49, %v350_v47 }
  0x2b   : > { %2087 = vmatmul.mubr.msk.bf16.gmra.mrb[8].mxu1 %vm392_vm1, %v2420_v51 }
  0x2c   : > { %2090 = vmatprep.mubr.msk.bf16.mxu1 %vm392_vm1, %v2424_v52 }
  0x2f   : > { %2059 = vmatmul.mubr.msk.bf16.gmra.mrb[12].mxu0 %vm392_vm1, %v2410_v45 }
  0x30   : > { %2062 = vmatprep.mubr.msk.bf16.mxu0 %vm392_vm1, %v2416_v48 }
  0x33   : > { %2091 = vmatmul.mubr.msk.bf16.gmra.mrb[12].mxu1 %vm392_vm1, %v2444_v63 }
  0x34   : > { %2094 = vmatprep.mubr.msk.bf16.mxu1 %vm392_vm1, %v2448_v0 }
  0x37   : > { %2063 = vmatmul.mubr.msk.bf16.gmra.mrb[16].mxu0 %vm392_vm1, %v2434_v57 }
  0x38   : > { %2066 = vmatprep.mubr.msk.bf16.mxu0 %vm392_vm1, %v2440_v60 }
  0x3b   : > { %2095 = vmatmul.mubr.msk.bf16.gmra.mrb[16].mxu1 %vm392_vm1, %v2464_v14 }
  0x3c   : > { %2098 = vmatprep.mubr.msk.bf16.mxu1 %vm392_vm1, %v378_v15 }
  0x3f   : > { %2067 = vmatmul.mubr.msk.bf16.gmra.mrb[20].mxu0 %vm392_vm1, %v363_v5 }
  0x40   : > { %2070 = vmatprep.mubr.msk.bf16.mxu0 %vm392_vm1, %v364_v9 }
  0x43   : > { %2099 = vmatmul.mubr.msk.bf16.gmra.mrb[20].mxu1 %vm392_vm1, %v379_v31 }
  0x44   : > { %2102 = vmatprep.mubr.msk.bf16.mxu1 %vm392_vm1, %v380_v32 }
  0x47   : > { %2071 = vmatmul.mubr.msk.bf16.gmra.mrb[24].mxu0 %vm392_vm1, %v365_v22 }
  0x48   : > { %2074 = vmatprep.mubr.msk.bf16.mxu0 %vm392_vm1, %v366_v27 }
  0x4b   : > { %2103 = vmatmul.mubr.msk.bf16.gmra.mrb[24].mxu1 %vm392_vm1, %v381_v44 }
  0x4c   : > { %2106 = vmatprep.mubr.msk.bf16.mxu1 %vm392_vm1, %v382_v46 }
  0x4f   : > { %2075 = vmatmul.mubr.msk.bf16.gmra.mrb[28].mxu0 %vm392_vm1, %v367_v37 }
  0x50   : > { %2178 = vmatprep.mubr.msk.bf16.mxu0 %vm392_vm1, %v2338_v7  ;;  %v2551_v7 = vld [vmem:[%s3152_s2] ss:$0 sm:$0xff] }
  0x53   : > { %2107 = vmatmul.mubr.msk.bf16.gmra.mrb[28].mxu1 %vm392_vm1, %v383_v50 }
  0x57   : > { %2179 = vmatmul.mubr.msk.bf16.vlgmr.msra.gmra.mrb[32].mxu0 %vm392_vm1, %v2343_v11 }
  0x58   : > { %2182 = vmatprep.mubr.msk.bf16.mxu0 %vm392_vm1, %v2345_v12 }
  0x5f   : > { %2183 = vmatmul.mubr.msk.bf16.gmra.mrb[36].mxu0 %vm392_vm1, %v2358_v18 }
  0x60   : > { %2186 = vmatprep.mubr.msk.bf16.mxu0 %vm392_vm1, %v2360_v19 }
  0x67   : > { %2187 = vmatmul.mubr.msk.bf16.gmra.mrb[40].mxu0 %vm392_vm1, %v2386_v33 }
  0x68   : > { %2190 = vmatprep.mubr.msk.bf16.mxu0 %vm392_vm1, %v2392_v36 }
  0x6f   : > { %2191 = vmatmul.mubr.msk.bf16.gmra.mrb[44].mxu0 %vm392_vm1, %v2410_v45 }
  0x70   : > { %2194 = vmatprep.mubr.msk.bf16.mxu0 %vm392_vm1, %v2416_v48 }
  0x77   : > { %2195 = vmatmul.mubr.msk.bf16.gmra.mrb[48].mxu0 %vm392_vm1, %v2434_v57 }
  0x78   : > { %2198 = vmatprep.mubr.msk.bf16.mxu0 %vm392_vm1, %v2440_v60 }
  0x7f   : > { %2199 = vmatmul.mubr.msk.bf16.gmra.mrb[52].mxu0 %vm392_vm1, %v363_v5 }
  0x80   : > { %2202 = vmatprep.mubr.msk.bf16.mxu0 %vm392_vm1, %v364_v9 }
  0x87   : > { %2203 = vmatmul.mubr.msk.bf16.gmra.mrb[56].mxu0 %vm392_vm1, %v365_v22 }
  0x88   : > { %2206 = vmatprep.mubr.msk.bf16.mxu0 %vm392_vm1, %v366_v27 }
  0x8f   : > { %2207 = vmatmul.mubr.msk.bf16.gmra.mrb[60].mxu0 %vm392_vm1, %v367_v37 }
  0x90   : > { %2210 = vmatprep.mubr.msk.bf16.mxu0 %vm392_vm1, %v2368_v24 }
  0x97   : > { %2211 = vmatmul.mubr.msk.bf16.gmra.mrb[64].mxu0 %vm392_vm1, %v2370_v25 }
  0x98   : > { %2214 = vmatprep.mubr.msk.bf16.mxu0 %vm392_vm1, %v2378_v30 }
  0x9f   : > { %2215 = vmatmul.mubr.msk.bf16.gmra.mrb[68].mxu0 %vm392_vm1, %v2396_v39 }
  0xa0   : > { %2218 = vmatprep.mubr.msk.bf16.mxu0 %vm392_vm1, %v2400_v40 }
  0xa7   : > { %2219 = vmatmul.mubr.msk.bf16.gmra.mrb[72].mxu0 %vm392_vm1, %v2420_v51 }
  0xa8   : > { %2222 = vmatprep.mubr.msk.bf16.mxu0 %vm392_vm1, %v2424_v52 }
  0xaf   : > { %2223 = vmatmul.mubr.msk.bf16.gmra.mrb[76].mxu0 %vm392_vm1, %v2444_v63 }
  0xb0   : > { %2226 = vmatprep.mubr.msk.bf16.mxu0 %vm392_vm1, %v2448_v0 }
  0xb7   : > { %2227 = vmatmul.mubr.msk.bf16.gmra.mrb[80].mxu0 %vm392_vm1, %v2464_v14 }
  0xb8   : > { %2230 = vmatprep.mubr.msk.bf16.mxu0 %vm392_vm1, %v378_v15 }
  0xbf   : > { %2231 = vmatmul.mubr.msk.bf16.gmra.mrb[84].mxu0 %vm392_vm1, %v379_v31 }
  0xc0   : > { %2234 = vmatprep.mubr.msk.bf16.mxu0 %vm392_vm1, %v380_v32 }
  0xc7   : > { %2235 = vmatmul.mubr.msk.bf16.gmra.mrb[88].mxu0 %vm392_vm1, %v381_v44 }
  0xc8   : > { %2238 = vmatprep.mubr.msk.bf16.mxu0 %vm392_vm1, %v382_v46 }
  0xcf   : > { %2239 = vmatmul.mubr.msk.bf16.gmra.mrb[92].mxu0 %vm392_vm1, %v383_v50 }
  0xea   : > { %v2048_v11 = vpop.f32.mrb[0].mxu0 }
  0xeb   : > { %v536_v12 = vadd.f32 %v2048_v11, %v2551_v7  ;;  %v527_v18 = vpop.f32.mrb[1].mxu0 }
  0xec   : > { %v528_v19 = vadd.f32 %v2551_v7, %v527_v18  ;;  %v2049_v24 = vpop.f32.mrb[2].mxu0 }
  0xed   : > { %v539_v25 = vadd.f32 %v2049_v24, %v2551_v7  ;;  %v530_v30 = vpop.f32.mrb[3].mxu0  ;;  %v784_v36 = vmax.f32 %v536_v12, 0.0 }
  0xee   : > { %v531_v33 = vadd.f32 %v2551_v7, %v530_v30  ;;  %v782_v40 = vmax.f32 %v528_v19, 0.0  ;;  %v2080_v59 = vpop.f32.mrb[0].mxu1 }
  0xef   : > { %v785_v39 = vmax.f32 %v539_v25, 0.0  ;;  %v664_v61 = vadd.f32 %v2080_v59, %v2551_v7  ;;  %v655_v62 = vpop.f32.mrb[1].mxu1 }
  0xf0   : > { %v783_v45 = vmax.f32 %v531_v33, 0.0  ;;  %v656_v1 = vadd.f32 %v2551_v7, %v655_v62  ;;  %v2081_v2 = vpop.f32.mrb[2].mxu1 }
  0xf1   : > { %v847_v48 = vpack.c.bf16 %v785_v39, %v784_v36  ;;  %v816_v5 = vmax.f32 %v664_v61, 0.0  ;;  %v667_v6 = vadd.f32 %v2081_v2, %v2551_v7  ;;  %v658_v8 = vpop.f32.mrb[3].mxu1 }
  0xf2   : > { %v846_v51 = vpack.c.bf16 %v783_v45, %v782_v40  ;;  %v2052_v52 = vpop.f32.mrb[4].mxu0  ;;  %v814_v10 = vmax.f32 %v656_v1, 0.0  ;;  %v659_v13 = vadd.f32 %v2551_v7, %v658_v8 }
  0xf3   : > { %v552_v53 = vadd.f32 %v2052_v52, %v2551_v7  ;;  %v543_v54 = vpop.f32.mrb[5].mxu0  ;;  %v817_v16 = vmax.f32 %v667_v6, 0.0 }
  0xf4   : > { %v544_v55 = vadd.f32 %v2551_v7, %v543_v54  ;;  %v2053_v56 = vpop.f32.mrb[6].mxu0  ;;  %2112 = vmatprep.mubr.msk.bf16.mxu1 %vm893_vm2, %v846_v51  ;;  %v815_v21 = vmax.f32 %v659_v13, 0.0 }
  0xf5   : > { %v555_v57 = vadd.f32 %v2053_v56, %v2551_v7  ;;  %v546_v58 = vpop.f32.mrb[7].mxu0  ;;  %2113 = vmatmul.mubr.msk.bf16.vlgmr.msra.gmra.mrb[32].mxu1 %vm893_vm2, %v847_v48  ;;  %v788_v63 = vmax.f32 %v552_v53, 0.0  ;;  %v2570_v26 = vpack.c.bf16 %v817_v16, %v816_v5 }
  0xf6   : > { %v547_v60 = vadd.f32 %v2551_v7, %v546_v58  ;;  %v786_v3 = vmax.f32 %v544_v55, 0.0  ;;  %v2574_v29 = vpack.c.bf16 %v815_v21, %v814_v10  ;;  %v2084_v31 = vpop.f32.mrb[4].mxu1 }
  0xf7   : > { %v789_v0 = vmax.f32 %v555_v57, 0.0  ;;  %v680_v34 = vadd.f32 %v2084_v31, %v2551_v7  ;;  %v671_v35 = vpop.f32.mrb[5].mxu1 }
  0xf8   : > { %v787_v4 = vmax.f32 %v547_v60, 0.0  ;;  %v672_v41 = vadd.f32 %v2551_v7, %v671_v35  ;;  %v2085_v42 = vpop.f32.mrb[6].mxu1 }
  0xf9   : > { %v849_v9 = vpack.c.bf16 %v789_v0, %v788_v63  ;;  %v820_v46 = vmax.f32 %v680_v34, 0.0  ;;  %v683_v47 = vadd.f32 %v2085_v42, %v2551_v7  ;;  %v674_v49 = vpop.f32.mrb[7].mxu1 }
  0xfa   : > { %v848_v14 = vpack.c.bf16 %v787_v4, %v786_v3  ;;  %v2056_v15 = vpop.f32.mrb[8].mxu0  ;;  %v818_v11 = vmax.f32 %v672_v41, 0.0  ;;  %v675_v12 = vadd.f32 %v2551_v7, %v674_v49 }
  0xfb   : > { %v568_v17 = vadd.f32 %v2056_v15, %v2551_v7  ;;  %v559_v20 = vpop.f32.mrb[9].mxu0  ;;  %v821_v24 = vmax.f32 %v683_v47, 0.0 }
  0xfc   : > { %v560_v22 = vadd.f32 %v2551_v7, %v559_v20  ;;  %v2057_v23 = vpop.f32.mrb[10].mxu0  ;;  %2116 = vmatprep.mubr.msk.bf16.mxu1 %vm893_vm2, %v848_v14  ;;  %v819_v33 = vmax.f32 %v675_v12, 0.0 }
  0xfd   : > { %v571_v27 = vadd.f32 %v2057_v23, %v2551_v7  ;;  %v562_v28 = vpop.f32.mrb[11].mxu0  ;;  %2117 = vmatmul.mubr.msk.bf16.gmra.mrb[36].mxu1 %vm893_vm2, %v849_v9  ;;  %v792_v37 = vmax.f32 %v568_v17, 0.0  ;;  %v2584_v40 = vpack.c.bf16 %v821_v24, %v820_v46 }
  0xfe   : > { %v563_v32 = vadd.f32 %v2551_v7, %v562_v28  ;;  %v790_v43 = vmax.f32 %v560_v22, 0.0  ;;  %v2588_v51 = vpack.c.bf16 %v819_v33, %v818_v11  ;;  %v2088_v52 = vpop.f32.mrb[8].mxu1 }
  0xff   : > { %v793_v38 = vmax.f32 %v571_v27, 0.0  ;;  %v696_v54 = vadd.f32 %v2088_v52, %v2551_v7  ;;  %v687_v55 = vpop.f32.mrb[9].mxu1 }
 0x100   : > { %v791_v44 = vmax.f32 %v563_v32, 0.0  ;;  %v688_v58 = vadd.f32 %v2551_v7, %v687_v55  ;;  %v2089_v59 = vpop.f32.mrb[10].mxu1 }
 0x101   : > { %v851_v50 = vpack.c.bf16 %v793_v38, %v792_v37  ;;  %v824_v62 = vmax.f32 %v696_v54, 0.0  ;;  %v699_v63 = vadd.f32 %v2089_v59, %v2551_v7  ;;  %v690_v0 = vpop.f32.mrb[11].mxu1 }
 0x102   : > { %v850_v18 = vpack.c.bf16 %v791_v44, %v790_v43  ;;  %v2060_v19 = vpop.f32.mrb[12].mxu0  ;;  %v822_v2 = vmax.f32 %v688_v58, 0.0  ;;  %v691_v3 = vadd.f32 %v2551_v7, %v690_v0 }
 0x103   : > { %v584_v25 = vadd.f32 %v2060_v19, %v2551_v7  ;;  %v575_v30 = vpop.f32.mrb[13].mxu0  ;;  %v825_v6 = vmax.f32 %v699_v63, 0.0 }
 0x104   : > { %v576_v36 = vadd.f32 %v2551_v7, %v575_v30  ;;  %v2061_v39 = vpop.f32.mrb[14].mxu0  ;;  %2120 = vmatprep.mubr.msk.bf16.mxu1 %vm893_vm2, %v850_v18  ;;  %v823_v10 = vmax.f32 %v691_v3, 0.0 }
 0x105   : > { %v587_v45 = vadd.f32 %v2061_v39, %v2551_v7  ;;  %v578_v48 = vpop.f32.mrb[15].mxu0  ;;  %2121 = vmatmul.mubr.msk.bf16.gmra.mrb[40].mxu1 %vm893_vm2, %v851_v50  ;;  %v796_v56 = vmax.f32 %v584_v25, 0.0  ;;  %v2598_v15 = vpack.c.bf16 %v825_v6, %v824_v62 }
 0x106   : > { %v579_v53 = vadd.f32 %v2551_v7, %v578_v48  ;;  %v794_v60 = vmax.f32 %v576_v36, 0.0  ;;  %v2602_v20 = vpack.c.bf16 %v823_v10, %v822_v2  ;;  %v2092_v21 = vpop.f32.mrb[12].mxu1 }
 0x107   : > { %v797_v57 = vmax.f32 %v587_v45, 0.0  ;;  %v712_v23 = vadd.f32 %v2092_v21, %v2551_v7  ;;  %v703_v27 = vpop.f32.mrb[13].mxu1 }
 0x108   : > { %v795_v61 = vmax.f32 %v579_v53, 0.0  ;;  %v704_v32 = vadd.f32 %v2551_v7, %v703_v27  ;;  %v2093_v34 = vpop.f32.mrb[14].mxu1 }
 0x109   : > { %v853_v1 = vpack.c.bf16 %v797_v57, %v796_v56  ;;  %v828_v38 = vmax.f32 %v712_v23, 0.0  ;;  %v715_v41 = vadd.f32 %v2093_v34, %v2551_v7  ;;  %v706_v42 = vpop.f32.mrb[15].mxu1 }
 0x10a   : > { %v852_v4 = vpack.c.bf16 %v795_v61, %v794_v60  ;;  %v2064_v5 = vpop.f32.mrb[16].mxu0  ;;  %v826_v44 = vmax.f32 %v704_v32, 0.0  ;;  %v707_v46 = vadd.f32 %v2551_v7, %v706_v42 }
 0x10b   : > { %v600_v8 = vadd.f32 %v2064_v5, %v2551_v7  ;;  %v591_v9 = vpop.f32.mrb[17].mxu0  ;;  %v829_v50 = vmax.f32 %v715_v41, 0.0 }
 0x10c   : > { %v592_v13 = vadd.f32 %v2551_v7, %v591_v9  ;;  %v2065_v14 = vpop.f32.mrb[18].mxu0  ;;  %2124 = vmatprep.mubr.msk.bf16.mxu1 %vm893_vm2, %v852_v4  ;;  %v827_v18 = vmax.f32 %v707_v46, 0.0 }
 0x10d   : > { %v603_v16 = vadd.f32 %v2065_v14, %v2551_v7  ;;  %v594_v17 = vpop.f32.mrb[19].mxu0  ;;  %2125 = vmatmul.mubr.msk.bf16.gmra.mrb[44].mxu1 %vm893_vm2, %v853_v1  ;;  %v800_v28 = vmax.f32 %v600_v8, 0.0  ;;  %v2612_v25 = vpack.c.bf16 %v829_v50, %v828_v38 }
 0x10e   : > { %v595_v22 = vadd.f32 %v2551_v7, %v594_v17  ;;  %v798_v35 = vmax.f32 %v592_v13, 0.0  ;;  %v2616_v36 = vpack.c.bf16 %v827_v18, %v826_v44  ;;  %v2096_v39 = vpop.f32.mrb[16].mxu1 }
 0x10f   : > { %v801_v31 = vmax.f32 %v603_v16, 0.0  ;;  %v728_v48 = vadd.f32 %v2096_v39, %v2551_v7  ;;  %v719_v52 = vpop.f32.mrb[17].mxu1 }
 0x110   : > { %v799_v37 = vmax.f32 %v595_v22, 0.0  ;;  %v720_v55 = vadd.f32 %v2551_v7, %v719_v52  ;;  %v2097_v56 = vpop.f32.mrb[18].mxu1 }
 0x111   : > { %v855_v43 = vpack.c.bf16 %v801_v31, %v800_v28  ;;  %v832_v59 = vmax.f32 %v728_v48, 0.0  ;;  %v731_v60 = vadd.f32 %v2097_v56, %v2551_v7  ;;  %v722_v61 = vpop.f32.mrb[19].mxu1 }
 0x112   : > { %v854_v47 = vpack.c.bf16 %v799_v37, %v798_v35  ;;  %v2068_v49 = vpop.f32.mrb[20].mxu0  ;;  %v830_v63 = vmax.f32 %v720_v55, 0.0  ;;  %v723_v0 = vadd.f32 %v2551_v7, %v722_v61 }
 0x113   : > { %v616_v11 = vadd.f32 %v2068_v49, %v2551_v7  ;;  %v607_v12 = vpop.f32.mrb[21].mxu0  ;;  %v833_v3 = vmax.f32 %v731_v60, 0.0 }
 0x114   : > { %v608_v19 = vadd.f32 %v2551_v7, %v607_v12  ;;  %v2069_v24 = vpop.f32.mrb[22].mxu0  ;;  %2128 = vmatprep.mubr.msk.bf16.mxu1 %vm893_vm2, %v854_v47  ;;  %v831_v6 = vmax.f32 %v723_v0, 0.0 }
 0x115   : > { %v619_v30 = vadd.f32 %v2069_v24, %v2551_v7  ;;  %v610_v33 = vpop.f32.mrb[23].mxu0  ;;  %2129 = vmatmul.mubr.msk.bf16.gmra.mrb[48].mxu1 %vm893_vm2, %v855_v43  ;;  %v804_v53 = vmax.f32 %v616_v11, 0.0  ;;  %v2626_v10 = vpack.c.bf16 %v833_v3, %v832_v59 }
 0x116   : > { %v611_v45 = vadd.f32 %v2551_v7, %v610_v33  ;;  %v802_v57 = vmax.f32 %v608_v19, 0.0  ;;  %v2630_v16 = vpack.c.bf16 %v831_v6, %v830_v63  ;;  %v2100_v17 = vpop.f32.mrb[20].mxu1 }
 0x117   : > { %v805_v54 = vmax.f32 %v619_v30, 0.0  ;;  %v744_v22 = vadd.f32 %v2100_v17, %v2551_v7  ;;  %v735_v23 = vpop.f32.mrb[21].mxu1 }
 0x118   : > { %v803_v58 = vmax.f32 %v611_v45, 0.0  ;;  %v736_v31 = vadd.f32 %v2551_v7, %v735_v23  ;;  %v2101_v32 = vpop.f32.mrb[22].mxu1 }
 0x119   : > { %v857_v62 = vpack.c.bf16 %v805_v54, %v804_v53  ;;  %v836_v37 = vmax.f32 %v744_v22, 0.0  ;;  %v747_v38 = vadd.f32 %v2101_v32, %v2551_v7  ;;  %v738_v41 = vpop.f32.mrb[23].mxu1 }
 0x11a   : > { %v856_v1 = vpack.c.bf16 %v803_v58, %v802_v57  ;;  %v2072_v2 = vpop.f32.mrb[24].mxu0  ;;  %v834_v43 = vmax.f32 %v736_v31, 0.0  ;;  %v739_v44 = vadd.f32 %v2551_v7, %v738_v41 }
 0x11b   : > { %v632_v4 = vadd.f32 %v2072_v2, %v2551_v7  ;;  %v623_v5 = vpop.f32.mrb[25].mxu0  ;;  %v837_v49 = vmax.f32 %v747_v38, 0.0 }
 0x11c   : > { %v624_v8 = vadd.f32 %v2551_v7, %v623_v5  ;;  %v2073_v9 = vpop.f32.mrb[26].mxu0  ;;  %2132 = vmatprep.mubr.msk.bf16.mxu1 %vm893_vm2, %v856_v1  ;;  %v835_v12 = vmax.f32 %v739_v44, 0.0 }
 0x11d   : > { %v635_v13 = vadd.f32 %v2073_v9, %v2551_v7  ;;  %v626_v14 = vpop.f32.mrb[27].mxu0  ;;  %2133 = vmatmul.mubr.msk.bf16.gmra.mrb[52].mxu1 %vm893_vm2, %v857_v62  ;;  %v808_v27 = vmax.f32 %v632_v4, 0.0  ;;  %v2640_v24 = vpack.c.bf16 %v837_v49, %v836_v37 }
 0x11e   : > { %v627_v21 = vadd.f32 %v2551_v7, %v626_v14  ;;  %v806_v34 = vmax.f32 %v624_v8, 0.0  ;;  %v872_v39 = vpack.c.bf16 %v835_v12, %v834_v43  ;;  %v2104_v45 = vpop.f32.mrb[24].mxu1 }
 0x11f   : > { %v809_v28 = vmax.f32 %v635_v13, 0.0  ;;  %v760_v52 = vadd.f32 %v2104_v45, %v2551_v7  ;;  %v751_v53 = vpop.f32.mrb[25].mxu1 }
 0x120   : > { %v807_v35 = vmax.f32 %v627_v21, 0.0  ;;  %v752_v56 = vadd.f32 %v2551_v7, %v751_v53  ;;  %v2105_v57 = vpop.f32.mrb[26].mxu1 }
 0x121   : > { %v859_v42 = vpack.c.bf16 %v809_v28, %v808_v27  ;;  %v840_v60 = vmax.f32 %v760_v52, 0.0  ;;  %v763_v61 = vadd.f32 %v2105_v57, %v2551_v7  ;;  %v754_v62 = vpop.f32.mrb[27].mxu1 }
 0x122   : > { %v858_v46 = vpack.c.bf16 %v807_v35, %v806_v34  ;;  %v2076_v47 = vpop.f32.mrb[28].mxu0  ;;  %v838_v0 = vmax.f32 %v752_v56, 0.0  ;;  %v755_v1 = vadd.f32 %v2551_v7, %v754_v62 }
 0x123   : > { %v648_v50 = vadd.f32 %v2076_v47, %v2551_v7  ;;  %v639_v11 = vpop.f32.mrb[29].mxu0  ;;  %v841_v3 = vmax.f32 %v763_v61, 0.0 }
 0x124   : > { %v640_v18 = vadd.f32 %v2551_v7, %v639_v11  ;;  %v2077_v19 = vpop.f32.mrb[30].mxu0  ;;  %2136 = vmatprep.mubr.msk.bf16.mxu1 %vm893_vm2, %v858_v46  ;;  %v839_v5 = vmax.f32 %v755_v1, 0.0 }
 0x125   : > { %v651_v30 = vadd.f32 %v2077_v19, %v2551_v7  ;;  %v642_v33 = vpop.f32.mrb[31].mxu0  ;;  %2137 = vmatmul.mubr.msk.bf16.gmra.mrb[56].mxu1 %vm893_vm2, %v859_v42  ;;  %v812_v54 = vmax.f32 %v648_v50, 0.0  ;;  %v875_v6 = vpack.c.bf16 %v841_v3, %v840_v60 }
 0x126   : > { %v643_v48 = vadd.f32 %v2551_v7, %v642_v33  ;;  %v810_v58 = vmax.f32 %v640_v18, 0.0  ;;  %v874_v8 = vpack.c.bf16 %v839_v5, %v838_v0  ;;  %v2108_v9 = vpop.f32.mrb[28].mxu1 }
 0x127   : > { %v813_v55 = vmax.f32 %v651_v30, 0.0  ;;  %v776_v13 = vadd.f32 %v2108_v9, %v2551_v7  ;;  %v767_v14 = vpop.f32.mrb[29].mxu1 }
 0x128   : > { %v811_v59 = vmax.f32 %v643_v48, 0.0  ;;  %v768_v17 = vadd.f32 %v2551_v7, %v767_v14  ;;  %v2109_v21 = vpop.f32.mrb[30].mxu1 }
 0x129   : > { %v861_v63 = vpack.c.bf16 %v813_v55, %v812_v54  ;;  %v844_v22 = vmax.f32 %v776_v13, 0.0  ;;  %v779_v23 = vadd.f32 %v2109_v21, %v2551_v7  ;;  %v770_v27 = vpop.f32.mrb[31].mxu1 }
 0x12a   : > { %v860_v2 = vpack.c.bf16 %v811_v59, %v810_v58  ;;  %v2649_v4 = vpop.f32.mrb[32].mxu0  ;;  %v842_v28 = vmax.f32 %v768_v17, 0.0  ;;  %v771_v31 = vadd.f32 %v2551_v7, %v770_v27 }
 0x12b   : > { %v845_v32 = vmax.f32 %v779_v23, 0.0  ;;  %v2671_v7 = vpop.f32.mrb[33].mxu0 }
 0x12c   : > { %2140 = vmatprep.mubr.msk.bf16.mxu1 %vm893_vm2, %v860_v2  ;;  %v843_v34 = vmax.f32 %v771_v31, 0.0  ;;  %v2673_v37 = vpop.f32.mrb[34].mxu0 }
 0x12d   : > { %2141 = vmatmul.mubr.msk.bf16.gmra.mrb[60].mxu1 %vm893_vm2, %v861_v63  ;;  %v877_v35 = vpack.c.bf16 %v845_v32, %v844_v22 }
 0x12e   : > { %2144 = vmatprep.mubr.msk.bf16.mxu1 %vm893_vm2, %v2574_v29  ;;  %v876_v29 = vpack.c.bf16 %v843_v34, %v842_v28 }
 0x135   : > { %2145 = vmatmul.mubr.msk.bf16.gmra.mrb[64].mxu1 %vm893_vm2, %v2570_v26  ;;  %v2675_v26 = vpop.f32.mrb[35].mxu0 }
 0x136   : > { %2148 = vmatprep.mubr.msk.bf16.mxu1 %vm893_vm2, %v2588_v51 }
 0x13d   : > { %2149 = vmatmul.mubr.msk.bf16.gmra.mrb[68].mxu1 %vm893_vm2, %v2584_v40  ;;  %v2681_v40 = vpop.f32.mrb[36].mxu0 }
 0x13e   : > { %2152 = vmatprep.mubr.msk.bf16.mxu1 %vm893_vm2, %v2602_v20  ;;  %v2683_v51 = vpop.f32.mrb[37].mxu0 }
 0x145   : > { %2153 = vmatmul.mubr.msk.bf16.gmra.mrb[72].mxu1 %vm893_vm2, %v2598_v15  ;;  %v2685_v15 = vpop.f32.mrb[38].mxu0 }
 0x146   : > { %2156 = vmatprep.mubr.msk.bf16.mxu1 %vm893_vm2, %v2616_v36  ;;  %v2687_v20 = vpop.f32.mrb[39].mxu0 }
 0x147   : > { %v2692_v36 = vpop.f32.mrb[40].mxu0 }
 0x148   : > { %v2694_v38 = vpop.f32.mrb[41].mxu0 }
 0x14d   : > { %2157 = vmatmul.mubr.msk.bf16.gmra.mrb[76].mxu1 %vm893_vm2, %v2612_v25  ;;  %v2696_v25 = vpop.f32.mrb[42].mxu0 }
 0x14e   : > { %2160 = vmatprep.mubr.msk.bf16.mxu1 %vm893_vm2, %v2630_v16  ;;  %v2698_v16 = vpop.f32.mrb[43].mxu0 }
 0x14f   : > { %v2703_v41 = vpop.f32.mrb[44].mxu0 }
 0x150   : > { %v2705_v42 = vpop.f32.mrb[45].mxu0 }
 0x155   : > { %2161 = vmatmul.mubr.msk.bf16.gmra.mrb[80].mxu1 %vm893_vm2, %v2626_v10  ;;  %v2707_v10 = vpop.f32.mrb[46].mxu0 }
 0x156   : > { %2164 = vmatprep.mubr.msk.bf16.mxu1 %vm893_vm2, %v872_v39  ;;  %v2709_v43 = vpop.f32.mrb[47].mxu0 }
 0x157   : > { %v2713_v44 = vpop.f32.mrb[48].mxu0 }
 0x158   : > { %v2715_v46 = vpop.f32.mrb[49].mxu0 }
 0x159   : > { %v2717_v47 = vpop.f32.mrb[50].mxu0 }
 0x15a   : > { %v2719_v49 = vpop.f32.mrb[51].mxu0 }
 0x15b   : > { %v2722_v50 = vpop.f32.mrb[52].mxu0 }
 0x15c   : > { %v2724_v11 = vpop.f32.mrb[53].mxu0 }
 0x15d   : > { %2165 = vmatmul.mubr.msk.bf16.gmra.mrb[84].mxu1 %vm893_vm2, %v2640_v24  ;;  %v2726_v12 = vpop.f32.mrb[54].mxu0 }
 0x15e   : > { %2168 = vmatprep.mubr.msk.bf16.mxu1 %vm893_vm2, %v874_v8  ;;  %v2728_v18 = vpop.f32.mrb[55].mxu0 }
 0x15f   : > { %v2730_v19 = vpop.f32.mrb[56].mxu0 }
 0x160   : > { %v2732_v24 = vpop.f32.mrb[57].mxu0 }
 0x161   : > { %v2734_v30 = vpop.f32.mrb[58].mxu0 }
 0x162   : > { %v2736_v33 = vpop.f32.mrb[59].mxu0 }
 0x163   : > { %v2738_v39 = vpop.f32.mrb[60].mxu0 }
 0x164   : > { %v2740_v45 = vpop.f32.mrb[61].mxu0 }
 0x165   : > { %2169 = vmatmul.mubr.msk.bf16.gmra.mrb[88].mxu1 %vm893_vm2, %v875_v6  ;;  %v2742_v48 = vpop.f32.mrb[62].mxu0 }
 0x166   : > { %2172 = vmatprep.mubr.msk.bf16.mxu1 %vm893_vm2, %v876_v29  ;;  %v2744_v52 = vpop.f32.mrb[63].mxu0 }
 0x16a   : > { %v2746_v53 = vpop.f32.mrb[64].mxu0 }
 0x16b   : > { %v2748_v54 = vpop.f32.mrb[65].mxu0 }
 0x16c   : > { %v2750_v55 = vpop.f32.mrb[66].mxu0 }
 0x16d   : > { %2173 = vmatmul.mubr.msk.bf16.gmra.mrb[92].mxu1 %vm893_vm2, %v877_v35  ;;  %v2752_v56 = vpop.f32.mrb[67].mxu0 }
 0x172   : > { %v2754_v57 = vpop.f32.mrb[68].mxu0 }
 0x173   : > { %v2756_v58 = vpop.f32.mrb[69].mxu0 }
 0x174   : > { %v2758_v59 = vpop.f32.mrb[70].mxu0 }
 0x175   : > { %v2760_v60 = vpop.f32.mrb[71].mxu0 }
 0x17a   : > { %v2762_v61 = vpop.f32.mrb[72].mxu0 }
 0x17b   : > { %v2764_v62 = vpop.f32.mrb[73].mxu0 }
 0x17c   : > { %v2766_v63 = vpop.f32.mrb[74].mxu0 }
 0x17d   : > { %v2768_v0 = vpop.f32.mrb[75].mxu0 }
 0x182   : > { %v2770_v1 = vpop.f32.mrb[76].mxu0 }
 0x183   : > { %v2772_v2 = vpop.f32.mrb[77].mxu0 }
 0x184   : > { %v2774_v3 = vpop.f32.mrb[78].mxu0 }
 0x185   : > { %v2776_v5 = vpop.f32.mrb[79].mxu0 }
 0x18a   : > { %v2778_v6 = vpop.f32.mrb[80].mxu0 }
 0x18b   : > { %3158 = vst [vmem:[#allocation3_spill] sm:$0xff] %v2778_v6  ;;  %v2780_v8 = vpop.f32.mrb[81].mxu0 }
 0x18c   : > { %3159 = vst [vmem:[#allocation4_spill] sm:$0xff] %v2780_v8  ;;  %v2782_v9 = vpop.f32.mrb[82].mxu0 }
 0x18d   : > { %3160 = vst [vmem:[#allocation5_spill] sm:$0xff] %v2782_v9  ;;  %v2784_v13 = vpop.f32.mrb[83].mxu0 }
 0x18e   : > { %3161 = vst [vmem:[#allocation6_spill] sm:$0xff] %v2784_v13 }
 0x192   : > { %v2786_v14 = vpop.f32.mrb[84].mxu0 }
 0x193   : > { %3162 = vst [vmem:[#allocation7_spill] sm:$0xff] %v2786_v14  ;;  %v2788_v17 = vpop.f32.mrb[85].mxu0 }
 0x194   : > { %3163 = vst [vmem:[#allocation8_spill] sm:$0xff] %v2788_v17  ;;  %v2790_v21 = vpop.f32.mrb[86].mxu0 }
 0x195   : > { %3164 = vst [vmem:[#allocation9_spill] sm:$0xff] %v2790_v21  ;;  %v2792_v22 = vpop.f32.mrb[87].mxu0 }
 0x196   : > { %3165 = vst [vmem:[#allocation10_spill] sm:$0xff] %v2792_v22  ;;  %v2813_v22 = vld [vmem:[%s3156_s6] ss:$0 sm:$0xff] }
 0x197   : > { %v1392_v13 = vadd.f32 %v2813_v22, %v2675_v26  ;;  %v1405_v26 = vadd.f32 %v2813_v22, %v2683_v51  ;;  %v1408_v51 = vadd.f32 %v2813_v22, %v2687_v20  ;;  %v1421_v20 = vadd.f32 %v2813_v22, %v2694_v38 }
 0x198   : > { %v1424_v38 = vadd.f32 %v2813_v22, %v2698_v16  ;;  %v1437_v16 = vadd.f32 %v2813_v22, %v2705_v42  ;;  %v1440_v42 = vadd.f32 %v2813_v22, %v2709_v43  ;;  %v1453_v43 = vadd.f32 %v2813_v22, %v2715_v46 }
 0x199   : > { %v1456_v46 = vadd.f32 %v2813_v22, %v2719_v49  ;;  %v1469_v49 = vadd.f32 %v2813_v22, %v2724_v11  ;;  %v1472_v11 = vadd.f32 %v2813_v22, %v2728_v18  ;;  %v1485_v18 = vadd.f32 %v2813_v22, %v2732_v24 }
 0x19a   : > { %v2794_v23 = vpop.f32.mrb[88].mxu0  ;;  %v1488_v24 = vadd.f32 %v2813_v22, %v2736_v33  ;;  %v1501_v33 = vadd.f32 %v2813_v22, %v2740_v45  ;;  %v1504_v45 = vadd.f32 %v2813_v22, %v2744_v52  ;;  %v1517_v52 = vadd.f32 %v2813_v22, %v2748_v54 }
 0x19b   : > { %3166 = vst [vmem:[#allocation11_spill] sm:$0xff] %v2794_v23  ;;  %v2796_v27 = vpop.f32.mrb[89].mxu0  ;;  %v1520_v54 = vadd.f32 %v2813_v22, %v2752_v56  ;;  %v1533_v56 = vadd.f32 %v2813_v22, %v2756_v58  ;;  %v1536_v58 = vadd.f32 %v2813_v22, %v2760_v60  ;;  %v1549_v60 = vadd.f32 %v2813_v22, %v2764_v62 }
 0x19c   : > { %3167 = vst [vmem:[#allocation12_spill] sm:$0xff] %v2796_v27  ;;  %v2798_v28 = vpop.f32.mrb[90].mxu0  ;;  %v1552_v62 = vadd.f32 %v2813_v22, %v2768_v0  ;;  %v1565_v0 = vadd.f32 %v2813_v22, %v2772_v2  ;;  %v1568_v2 = vadd.f32 %v2813_v22, %v2776_v5  ;;  %v3175_v5 = vld [vmem:[#allocation4_spill] sm:$0xff] }
 0x19d   : > { %3168 = vst [vmem:[#allocation13_spill] sm:$0xff] %v2798_v28  ;;  %v2800_v31 = vpop.f32.mrb[91].mxu0  ;;  %v2818_v28 = vld [vmem:[%s3154_s4] ss:$0 sm:$0xff] }
 0x19e   : > { %3169 = vst [vmem:[#allocation14_spill] sm:$0xff] %v2800_v31 }
 0x1a2   : > { %v2802_v32 = vpop.f32.mrb[92].mxu0 }
 0x1a3   : > { %3170 = vst [vmem:[#allocation15_spill] sm:$0xff] %v2802_v32  ;;  %v2804_v34 = vpop.f32.mrb[93].mxu0  ;;  %v1397_v32 = vadd.f32 %v2649_v4, %v2813_v22 }
 0x1a4   : > { %3171 = vst [vmem:[#allocation16_spill] sm:$0xff] %v2804_v34  ;;  %v2806_v35 = vpop.f32.mrb[94].mxu0 }
 0x1a5   : > { %3172 = vst [vmem:[#allocation17_spill] sm:$0xff] %v2806_v35  ;;  %v2808_v29 = vpop.f32.mrb[95].mxu0 }
 0x1a6   : > { %3173 = vst [vmem:[#allocation18_spill] sm:$0xff] %v2808_v29  ;;  %v1389_v29 = vadd.f32 %v2813_v22, %v2671_v7 }
 0x1c8   : > { %v2114_v31 = vpop.f32.mrb[32].mxu1 }
 0x1c9   : > { %v1033_v34 = vadd.f32 %v2114_v31, %v2818_v28  ;;  %v1024_v27 = vpop.f32.mrb[33].mxu1  ;;  %v1400_v31 = vadd.f32 %v2673_v37, %v2813_v22 }
 0x1ca   : > { %v1025_v35 = vadd.f32 %v2818_v28, %v1024_v27  ;;  %v2115_v23 = vpop.f32.mrb[34].mxu1 }
 0x1cb   : > { %v1281_v21 = vmax.f32 %v1033_v34, 0.0  ;;  %v1036_v17 = vadd.f32 %v2115_v23, %v2818_v28  ;;  %v1027_v14 = vpop.f32.mrb[35].mxu1 }
 0x1cc   : > { %v1279_v4 = vmax.f32 %v1025_v35, 0.0  ;;  %v1028_v7 = vadd.f32 %v2818_v28, %v1027_v14  ;;  %v1413_v14 = vadd.f32 %v2681_v40, %v2813_v22 }
 0x1cd   : > { %v1645_v27 = vadd.f32 %v1397_v32, %v1281_v21  ;;  %v1282_v23 = vmax.f32 %v1036_v17, 0.0 }
 0x1ce   : > { %v1643_v34 = vadd.f32 %v1389_v29, %v1279_v4  ;;  %v1280_v9 = vmax.f32 %v1028_v7, 0.0 }
 0x1cf   : > { %1710 = vst.msk [vmem:[%s2832_s22 + $0x10] sm:$0xff] %vm1707_vm3, %v1645_v27  ;;  %v1646_v8 = vadd.f32 %v1400_v31, %v1282_v23 }
 0x1d0   : > { %1708 = vst.msk [vmem:[%s2832_s22] sm:$0xff] %vm1707_vm3, %v1643_v34  ;;  %v1644_v6 = vadd.f32 %v1392_v13, %v1280_v9  ;;  %v2118_v35 = vpop.f32.mrb[36].mxu1 }
 0x1d1   : > { %1711 = vst.msk [vmem:[%s2832_s22 + $0x18] sm:$0xff] %vm1707_vm3, %v1646_v8  ;;  %v1049_v37 = vadd.f32 %v2118_v35, %v2818_v28  ;;  %v1040_v17 = vpop.f32.mrb[37].mxu1 }
 0x1d2   : > { %1709 = vst.msk [vmem:[%s2832_s22 + $0x8] sm:$0xff] %vm1707_vm3, %v1644_v6  ;;  %v1041_v21 = vadd.f32 %v2818_v28, %v1040_v17  ;;  %v2119_v32 = vpop.f32.mrb[38].mxu1  ;;  %v1416_v6 = vadd.f32 %v2685_v15, %v2813_v22 }
 0x1d3   : > { %v1285_v9 = vmax.f32 %v1049_v37, 0.0  ;;  %v1052_v8 = vadd.f32 %v2119_v32, %v2818_v28  ;;  %v1043_v13 = vpop.f32.mrb[39].mxu1 }
 0x1d4   : > { %v1283_v29 = vmax.f32 %v1041_v21, 0.0  ;;  %v1044_v40 = vadd.f32 %v2818_v28, %v1043_v13 }
 0x1d5   : > { %v1649_v4 = vadd.f32 %v1413_v14, %v1285_v9  ;;  %v1286_v7 = vmax.f32 %v1052_v8, 0.0  ;;  %v1429_v14 = vadd.f32 %v2692_v36, %v2813_v22 }
 0x1d6   : > { %v1647_v27 = vadd.f32 %v1405_v26, %v1283_v29  ;;  %v1284_v31 = vmax.f32 %v1044_v40, 0.0  ;;  %v1432_v29 = vadd.f32 %v2696_v25, %v2813_v22 }
 0x1d7   : > { %1714 = vst.msk [vmem:[%s2832_s22 + $0x30] sm:$0xff] %vm1707_vm3, %v1649_v4  ;;  %v1650_v23 = vadd.f32 %v1416_v6, %v1286_v7 }
 0x1d8   : > { %1712 = vst.msk [vmem:[%s2832_s22 + $0x20] sm:$0xff] %vm1707_vm3, %v1647_v27  ;;  %v1648_v34 = vadd.f32 %v1408_v51, %v1284_v31  ;;  %v2122_v35 = vpop.f32.mrb[40].mxu1  ;;  %v1445_v31 = vadd.f32 %v2703_v41, %v2813_v22 }
 0x1d9   : > { %1715 = vst.msk [vmem:[%s2832_s22 + $0x38] sm:$0xff] %vm1707_vm3, %v1650_v23  ;;  %v1065_v15 = vadd.f32 %v2122_v35, %v2818_v28  ;;  %v1056_v37 = vpop.f32.mrb[41].mxu1 }
 0x1da   : > { %1713 = vst.msk [vmem:[%s2832_s22 + $0x28] sm:$0xff] %vm1707_vm3, %v1648_v34  ;;  %v1057_v17 = vadd.f32 %v2818_v28, %v1056_v37  ;;  %v2123_v26 = vpop.f32.mrb[42].mxu1 }
 0x1db   : > { %v1289_v21 = vmax.f32 %v1065_v15, 0.0  ;;  %v1068_v32 = vadd.f32 %v2123_v26, %v2818_v28  ;;  %v1059_v9 = vpop.f32.mrb[43].mxu1  ;;  %v1448_v26 = vadd.f32 %v2707_v10, %v2813_v22 }
 0x1dc   : > { %v1287_v8 = vmax.f32 %v1057_v17, 0.0  ;;  %v1060_v36 = vadd.f32 %v2818_v28, %v1059_v9 }
 0x1dd   : > { %v1653_v13 = vadd.f32 %v1429_v14, %v1289_v21  ;;  %v1290_v40 = vmax.f32 %v1068_v32, 0.0 }
 0x1de   : > { %v1651_v4 = vadd.f32 %v1421_v20, %v1287_v8  ;;  %v1288_v6 = vmax.f32 %v1060_v36, 0.0 }
 0x1df   : > { %1718 = vst.msk [vmem:[%s2832_s22 + $0x50] sm:$0xff] %vm1707_vm3, %v1653_v13  ;;  %v1654_v7 = vadd.f32 %v1432_v29, %v1290_v40  ;;  %v1461_v29 = vadd.f32 %v2713_v44, %v2813_v22 }
 0x1e0   : > { %1716 = vst.msk [vmem:[%s2832_s22 + $0x40] sm:$0xff] %vm1707_vm3, %v1651_v4  ;;  %v1652_v27 = vadd.f32 %v1424_v38, %v1288_v6  ;;  %v2126_v51 = vpop.f32.mrb[44].mxu1 }
 0x1e1   : > { %1719 = vst.msk [vmem:[%s2832_s22 + $0x58] sm:$0xff] %vm1707_vm3, %v1654_v7  ;;  %v1081_v25 = vadd.f32 %v2126_v51, %v2818_v28  ;;  %v1072_v23 = vpop.f32.mrb[45].mxu1 }
 0x1e2   : > { %1717 = vst.msk [vmem:[%s2832_s22 + $0x48] sm:$0xff] %vm1707_vm3, %v1652_v27  ;;  %v1073_v34 = vadd.f32 %v2818_v28, %v1072_v23  ;;  %v2127_v35 = vpop.f32.mrb[46].mxu1 }
 0x1e3   : > { %v1293_v14 = vmax.f32 %v1081_v25, 0.0  ;;  %v1084_v15 = vadd.f32 %v2127_v35, %v2818_v28  ;;  %v1075_v37 = vpop.f32.mrb[47].mxu1  ;;  %v1464_v25 = vadd.f32 %v2717_v47, %v2813_v22 }
 0x1e4   : > { %v1291_v20 = vmax.f32 %v1073_v34, 0.0  ;;  %v1076_v41 = vadd.f32 %v2818_v28, %v1075_v37  ;;  %v1477_v37 = vadd.f32 %v2722_v50, %v2813_v22 }
 0x1e5   : > { %v1657_v17 = vadd.f32 %v1445_v31, %v1293_v14  ;;  %v1294_v21 = vmax.f32 %v1084_v15, 0.0 }
 0x1e6   : > { %v1655_v32 = vadd.f32 %v1437_v16, %v1291_v20  ;;  %v1292_v9 = vmax.f32 %v1076_v41, 0.0 }
 0x1e7   : > { %1722 = vst.msk [vmem:[%s2832_s22 + $0x70] sm:$0xff] %vm1707_vm3, %v1657_v17  ;;  %v1658_v8 = vadd.f32 %v1448_v26, %v1294_v21 }
 0x1e8   : > { %1720 = vst.msk [vmem:[%s2832_s22 + $0x60] sm:$0xff] %vm1707_vm3, %v1655_v32  ;;  %v1656_v36 = vadd.f32 %v1440_v42, %v1292_v9  ;;  %v2130_v13 = vpop.f32.mrb[48].mxu1 }
 0x1e9   : > { %1723 = vst.msk [vmem:[%s2832_s22 + $0x78] sm:$0xff] %vm1707_vm3, %v1658_v8  ;;  %v1097_v10 = vadd.f32 %v2130_v13, %v2818_v28  ;;  %v1088_v40 = vpop.f32.mrb[49].mxu1  ;;  %v1480_v8 = vadd.f32 %v2726_v12, %v2813_v22 }
 0x1ea   : > { %1721 = vst.msk [vmem:[%s2832_s22 + $0x68] sm:$0xff] %vm1707_vm3, %v1656_v36  ;;  %v1089_v4 = vadd.f32 %v2818_v28, %v1088_v40  ;;  %v2131_v38 = vpop.f32.mrb[50].mxu1 }
 0x1eb   : > { %v1297_v6 = vmax.f32 %v1097_v10, 0.0  ;;  %v1100_v7 = vadd.f32 %v2131_v38, %v2818_v28  ;;  %v1091_v27 = vpop.f32.mrb[51].mxu1 }
 0x1ec   : > { %v1295_v51 = vmax.f32 %v1089_v4, 0.0  ;;  %v1092_v44 = vadd.f32 %v2818_v28, %v1091_v27  ;;  %v1493_v4 = vadd.f32 %v2730_v19, %v2813_v22 }
 0x1ed   : > { %v1661_v31 = vadd.f32 %v1461_v29, %v1297_v6  ;;  %v1298_v23 = vmax.f32 %v1100_v7, 0.0 }
 0x1ee   : > { %v1659_v16 = vadd.f32 %v1453_v43, %v1295_v51  ;;  %v1296_v34 = vmax.f32 %v1092_v44, 0.0 }
 0x1ef   : > { %1726 = vst.msk [vmem:[%s2832_s22 + $0x90] sm:$0xff] %vm1707_vm3, %v1661_v31  ;;  %v1662_v35 = vadd.f32 %v1464_v25, %v1298_v23  ;;  %v1496_v23 = vadd.f32 %v2734_v30, %v2813_v22 }
 0x1f0   : > { %1724 = vst.msk [vmem:[%s2832_s22 + $0x80] sm:$0xff] %vm1707_vm3, %v1659_v16  ;;  %v1660_v14 = vadd.f32 %v1456_v46, %v1296_v34  ;;  %v2134_v15 = vpop.f32.mrb[52].mxu1 }
 0x1f1   : > { %1727 = vst.msk [vmem:[%s2832_s22 + $0x98] sm:$0xff] %vm1707_vm3, %v1662_v35  ;;  %v1113_v47 = vadd.f32 %v2134_v15, %v2818_v28  ;;  %v1104_v20 = vpop.f32.mrb[53].mxu1 }
 0x1f2   : > { %1725 = vst.msk [vmem:[%s2832_s22 + $0x88] sm:$0xff] %vm1707_vm3, %v1660_v14  ;;  %v1105_v41 = vadd.f32 %v2818_v28, %v1104_v20  ;;  %v2135_v17 = vpop.f32.mrb[54].mxu1 }
 0x1f3   : > { %v1301_v26 = vmax.f32 %v1113_v47, 0.0  ;;  %v1116_v21 = vadd.f32 %v2135_v17, %v2818_v28  ;;  %v1107_v32 = vpop.f32.mrb[55].mxu1 }
 0x1f4   : > { %v1299_v42 = vmax.f32 %v1105_v41, 0.0  ;;  %v1108_v50 = vadd.f32 %v2818_v28, %v1107_v32 }
 0x1f5   : > { %v1665_v9 = vadd.f32 %v1477_v37, %v1301_v26  ;;  %v1302_v36 = vmax.f32 %v1116_v21, 0.0  ;;  %v1509_v37 = vadd.f32 %v2738_v39, %v2813_v22 }
 0x1f6   : > { %v1663_v13 = vadd.f32 %v1469_v49, %v1299_v42  ;;  %v1300_v29 = vmax.f32 %v1108_v50, 0.0  ;;  %v1512_v42 = vadd.f32 %v2742_v48, %v2813_v22 }
 0x1f7   : > { %1730 = vst.msk [vmem:[%s2832_s22 + $0xb0] sm:$0xff] %vm1707_vm3, %v1665_v9  ;;  %v1666_v10 = vadd.f32 %v1480_v8, %v1302_v36 }
 0x1f8   : > { %1728 = vst.msk [vmem:[%s2832_s22 + $0xa0] sm:$0xff] %vm1707_vm3, %v1663_v13  ;;  %v1664_v40 = vadd.f32 %v1472_v11, %v1300_v29  ;;  %v2138_v43 = vpop.f32.mrb[56].mxu1  ;;  %v1525_v29 = vadd.f32 %v2746_v53, %v2813_v22 }
 0x1f9   : > { %1731 = vst.msk [vmem:[%s2832_s22 + $0xb8] sm:$0xff] %vm1707_vm3, %v1666_v10  ;;  %v1129_v12 = vadd.f32 %v2138_v43, %v2818_v28  ;;  %v1120_v38 = vpop.f32.mrb[57].mxu1 }
 0x1fa   : > { %1729 = vst.msk [vmem:[%s2832_s22 + $0xa8] sm:$0xff] %vm1707_vm3, %v1664_v40  ;;  %v1121_v6 = vadd.f32 %v2818_v28, %v1120_v38  ;;  %v2139_v7 = vpop.f32.mrb[58].mxu1 }
 0x1fb   : > { %v1305_v27 = vmax.f32 %v1129_v12, 0.0  ;;  %v1132_v51 = vadd.f32 %v2139_v7, %v2818_v28  ;;  %v1123_v44 = vpop.f32.mrb[59].mxu1  ;;  %v1528_v7 = vadd.f32 %v2750_v55, %v2813_v22 }
 0x1fc   : > { %v1303_v31 = vmax.f32 %v1121_v6, 0.0  ;;  %v1124_v19 = vadd.f32 %v2818_v28, %v1123_v44 }
 0x1fd   : > { %v1669_v25 = vadd.f32 %v1493_v4, %v1305_v27  ;;  %v1306_v16 = vmax.f32 %v1132_v51, 0.0 }
 0x1fe   : > { %v1667_v46 = vadd.f32 %v1485_v18, %v1303_v31  ;;  %v1304_v34 = vmax.f32 %v1124_v19, 0.0 }
 0x1ff   : > { %1734 = vst.msk [vmem:[%s2832_s22 + $0xd0] sm:$0xff] %vm1707_vm3, %v1669_v25  ;;  %v1670_v35 = vadd.f32 %v1496_v23, %v1306_v16  ;;  %v1541_v23 = vadd.f32 %v2754_v57, %v2813_v22 }
 0x200   : > { %1732 = vst.msk [vmem:[%s2832_s22 + $0xc0] sm:$0xff] %vm1707_vm3, %v1667_v46  ;;  %v1668_v14 = vadd.f32 %v1488_v24, %v1304_v34  ;;  %v2142_v15 = vpop.f32.mrb[60].mxu1 }
 0x201   : > { %1735 = vst.msk [vmem:[%s2832_s22 + $0xd8] sm:$0xff] %vm1707_vm3, %v1670_v35  ;;  %v1145_v30 = vadd.f32 %v2142_v15, %v2818_v28  ;;  %v1136_v47 = vpop.f32.mrb[61].mxu1 }
 0x202   : > { %1733 = vst.msk [vmem:[%s2832_s22 + $0xc8] sm:$0xff] %vm1707_vm3, %v1668_v14  ;;  %v1137_v20 = vadd.f32 %v2818_v28, %v1136_v47  ;;  %v2143_v49 = vpop.f32.mrb[62].mxu1 }
 0x203   : > { %v1309_v41 = vmax.f32 %v1145_v30, 0.0  ;;  %v1148_v17 = vadd.f32 %v2143_v49, %v2818_v28  ;;  %v1139_v26 = vpop.f32.mrb[63].mxu1  ;;  %v1544_v30 = vadd.f32 %v2758_v59, %v2813_v22 }
 0x204   : > { %v1307_v21 = vmax.f32 %v1137_v20, 0.0  ;;  %v1140_v39 = vadd.f32 %v2818_v28, %v1139_v26  ;;  %v1557_v26 = vadd.f32 %v2762_v61, %v2813_v22 }
 0x205   : > { %v1673_v32 = vadd.f32 %v1509_v37, %v1309_v41  ;;  %v1310_v50 = vmax.f32 %v1148_v17, 0.0 }
 0x206   : > { %v1671_v9 = vadd.f32 %v1501_v33, %v1307_v21  ;;  %v1308_v8 = vmax.f32 %v1140_v39, 0.0 }
 0x207   : > { %1738 = vst.msk [vmem:[%s2832_s22 + $0xf0] sm:$0xff] %vm1707_vm3, %v1673_v32  ;;  %v1674_v36 = vadd.f32 %v1512_v42, %v1310_v50 }
 0x208   : > { %1736 = vst.msk [vmem:[%s2832_s22 + $0xe0] sm:$0xff] %vm1707_vm3, %v1671_v9  ;;  %v1672_v13 = vadd.f32 %v1504_v45, %v1308_v8  ;;  %v2146_v11 = vpop.f32.mrb[64].mxu1 }
 0x209   : > { %1739 = vst.msk [vmem:[%s2832_s22 + $0xf8] sm:$0xff] %vm1707_vm3, %v1674_v36  ;;  %v1161_v48 = vadd.f32 %v2146_v11, %v2818_v28  ;;  %v1152_v10 = vpop.f32.mrb[65].mxu1  ;;  %v1560_v36 = vadd.f32 %v2766_v63, %v2813_v22 }
 0x20a   : > { %1737 = vst.msk [vmem:[%s2832_s22 + $0xe8] sm:$0xff] %vm1707_vm3, %v1672_v13  ;;  %v1153_v40 = vadd.f32 %v2818_v28, %v1152_v10  ;;  %v2147_v43 = vpop.f32.mrb[66].mxu1 }
 0x20b   : > { %v1313_v4 = vmax.f32 %v1161_v48, 0.0  ;;  %v1164_v12 = vadd.f32 %v2147_v43, %v2818_v28  ;;  %v1155_v38 = vpop.f32.mrb[67].mxu1 }
 0x20c   : > { %v1311_v18 = vmax.f32 %v1153_v40, 0.0  ;;  %v1156_v53 = vadd.f32 %v2818_v28, %v1155_v38  ;;  %v1573_v40 = vadd.f32 %v2770_v1, %v2813_v22 }
 0x20d   : > { %v1677_v6 = vadd.f32 %v1525_v29, %v1313_v4  ;;  %v1314_v27 = vmax.f32 %v1164_v12, 0.0 }
 0x20e   : > { %v1675_v51 = vadd.f32 %v1517_v52, %v1311_v18  ;;  %v1312_v44 = vmax.f32 %v1156_v53, 0.0 }
 0x20f   : > { %1742 = vst.msk [vmem:[%s2832_s22 + $0x110] sm:$0xff] %vm1707_vm3, %v1677_v6  ;;  %v1678_v31 = vadd.f32 %v1528_v7, %v1314_v27  ;;  %v1576_v27 = vadd.f32 %v2774_v3, %v2813_v22 }
 0x210   : > { %1740 = vst.msk [vmem:[%s2832_s22 + $0x100] sm:$0xff] %vm1707_vm3, %v1675_v51  ;;  %v1676_v19 = vadd.f32 %v1520_v54, %v1312_v44  ;;  %v2150_v25 = vpop.f32.mrb[68].mxu1 }
 0x211   : > { %1743 = vst.msk [vmem:[%s2832_s22 + $0x118] sm:$0xff] %vm1707_vm3, %v1678_v31  ;;  %v1177_v55 = vadd.f32 %v2150_v25, %v2818_v28  ;;  %v1168_v16 = vpop.f32.mrb[69].mxu1 }
 0x212   : > { %1741 = vst.msk [vmem:[%s2832_s22 + $0x108] sm:$0xff] %vm1707_vm3, %v1676_v19  ;;  %v1169_v46 = vadd.f32 %v2818_v28, %v1168_v16  ;;  %v2151_v24 = vpop.f32.mrb[70].mxu1 }
 0x213   : > { %v1317_v34 = vmax.f32 %v1177_v55, 0.0  ;;  %v1180_v35 = vadd.f32 %v2151_v24, %v2818_v28  ;;  %v1171_v14 = vpop.f32.mrb[71].mxu1 }
 0x214   : > { %v1315_v15 = vmax.f32 %v1169_v46, 0.0  ;;  %v1172_v57 = vadd.f32 %v2818_v28, %v1171_v14 }
 0x215   : > { %v1681_v37 = vadd.f32 %v1541_v23, %v1317_v34  ;;  %v1318_v47 = vmax.f32 %v1180_v35, 0.0  ;;  %v3174_v23 = vld [vmem:[#allocation3_spill] sm:$0xff] }
 0x216   : > { %v1679_v33 = vadd.f32 %v1533_v56, %v1315_v15  ;;  %v1316_v20 = vmax.f32 %v1172_v57, 0.0  ;;  %v1589_v55 = vadd.f32 %v3174_v23, %v2813_v22  ;;  %v1581_v56 = vadd.f32 %v2813_v22, %v3175_v5  ;;  %v3184_v23 = vld [vmem:[#allocation13_spill] sm:$0xff]  ;;  %v3185_v5 = vld [vmem:[#allocation14_spill] sm:$0xff] }
 0x217   : > { %1746 = vst.msk [vmem:[%s2832_s22 + $0x130] sm:$0xff] %vm1707_vm3, %v1681_v37  ;;  %v1682_v49 = vadd.f32 %v1544_v30, %v1318_v47  ;;  %v3176_v30 = vld [vmem:[#allocation5_spill] sm:$0xff] }
 0x218   : > { %1744 = vst.msk [vmem:[%s2832_s22 + $0x120] sm:$0xff] %vm1707_vm3, %v1679_v33  ;;  %v1680_v41 = vadd.f32 %v1536_v58, %v1316_v20  ;;  %v2154_v17 = vpop.f32.mrb[72].mxu1  ;;  %v1592_v47 = vadd.f32 %v3176_v30, %v2813_v22  ;;  %v3177_v20 = vld [vmem:[#allocation6_spill] sm:$0xff]  ;;  %v3187_v30 = vld [vmem:[#allocation16_spill] sm:$0xff] }
 0x219   : > { %1747 = vst.msk [vmem:[%s2832_s22 + $0x138] sm:$0xff] %vm1707_vm3, %v1682_v49  ;;  %v1193_v59 = vadd.f32 %v2154_v17, %v2818_v28  ;;  %v1184_v21 = vpop.f32.mrb[73].mxu1  ;;  %v1584_v49 = vadd.f32 %v2813_v22, %v3177_v20 }
 0x21a   : > { %1745 = vst.msk [vmem:[%s2832_s22 + $0x128] sm:$0xff] %vm1707_vm3, %v1680_v41  ;;  %v1185_v39 = vadd.f32 %v2818_v28, %v1184_v21  ;;  %v2155_v32 = vpop.f32.mrb[74].mxu1  ;;  %v3178_v21 = vld [vmem:[#allocation7_spill] sm:$0xff] }
 0x21b   : > { %v1321_v42 = vmax.f32 %v1193_v59, 0.0  ;;  %v1196_v50 = vadd.f32 %v2155_v32, %v2818_v28  ;;  %v1187_v9 = vpop.f32.mrb[75].mxu1 }
 0x21c   : > { %v1319_v45 = vmax.f32 %v1185_v39, 0.0  ;;  %v1188_v61 = vadd.f32 %v2818_v28, %v1187_v9 }
 0x21d   : > { %v1685_v8 = vadd.f32 %v1557_v26, %v1321_v42  ;;  %v1322_v13 = vmax.f32 %v1196_v50, 0.0  ;;  %v3179_v42 = vld [vmem:[#allocation8_spill] sm:$0xff] }
 0x21e   : > { %v1683_v11 = vadd.f32 %v1549_v60, %v1319_v45  ;;  %v1320_v29 = vmax.f32 %v1188_v61, 0.0  ;;  %v1605_v60 = vadd.f32 %v3178_v21, %v2813_v22  ;;  %v1597_v50 = vadd.f32 %v2813_v22, %v3179_v42  ;;  %v3188_v21 = vld [vmem:[#allocation17_spill] sm:$0xff]  ;;  %v3189_v42 = vld [vmem:[#allocation18_spill] sm:$0xff] }
 0x21f   : > { %1750 = vst.msk [vmem:[%s2832_s22 + $0x150] sm:$0xff] %vm1707_vm3, %v1685_v8  ;;  %v1686_v48 = vadd.f32 %v1560_v36, %v1322_v13 }
 0x220   : > { %1748 = vst.msk [vmem:[%s2832_s22 + $0x140] sm:$0xff] %vm1707_vm3, %v1683_v11  ;;  %v1684_v10 = vadd.f32 %v1552_v62, %v1320_v29  ;;  %v2158_v52 = vpop.f32.mrb[76].mxu1  ;;  %v3180_v29 = vld [vmem:[#allocation9_spill] sm:$0xff] }
 0x221   : > { %1751 = vst.msk [vmem:[%s2832_s22 + $0x158] sm:$0xff] %vm1707_vm3, %v1686_v48  ;;  %v1209_v63 = vadd.f32 %v2158_v52, %v2818_v28  ;;  %v1200_v43 = vpop.f32.mrb[77].mxu1  ;;  %v1608_v48 = vadd.f32 %v3180_v29, %v2813_v22 }
 0x222   : > { %1749 = vst.msk [vmem:[%s2832_s22 + $0x148] sm:$0xff] %vm1707_vm3, %v1684_v10  ;;  %v1201_v4 = vadd.f32 %v2818_v28, %v1200_v43  ;;  %v2159_v12 = vpop.f32.mrb[78].mxu1 }
 0x223   : > { %v1325_v38 = vmax.f32 %v1209_v63, 0.0  ;;  %v1212_v18 = vadd.f32 %v2159_v12, %v2818_v28  ;;  %v1203_v53 = vpop.f32.mrb[79].mxu1 }
 0x224   : > { %v1323_v6 = vmax.f32 %v1201_v4, 0.0  ;;  %v1204_v1 = vadd.f32 %v2818_v28, %v1203_v53 }
 0x225   : > { %v1689_v7 = vadd.f32 %v1573_v40, %v1325_v38  ;;  %v1326_v51 = vmax.f32 %v1212_v18, 0.0  ;;  %v3181_v40 = vld [vmem:[#allocation10_spill] sm:$0xff]  ;;  %v3182_v38 = vld [vmem:[#allocation11_spill] sm:$0xff] }
 0x226   : > { %v1687_v54 = vadd.f32 %v1565_v0, %v1323_v6  ;;  %v1324_v44 = vmax.f32 %v1204_v1, 0.0  ;;  %v1600_v63 = vadd.f32 %v2813_v22, %v3181_v40  ;;  %v1621_v18 = vadd.f32 %v3182_v38, %v2813_v22  ;;  %v3183_v1 = vld [vmem:[#allocation12_spill] sm:$0xff] }
 0x227   : > { %1754 = vst.msk [vmem:[%s2832_s22 + $0x170] sm:$0xff] %vm1707_vm3, %v1689_v7  ;;  %v1690_v31 = vadd.f32 %v1576_v27, %v1326_v51  ;;  %v1613_v7 = vadd.f32 %v2813_v22, %v3183_v1 }
 0x228   : > { %1752 = vst.msk [vmem:[%s2832_s22 + $0x160] sm:$0xff] %vm1707_vm3, %v1687_v54  ;;  %v1688_v19 = vadd.f32 %v1568_v2, %v1324_v44  ;;  %v2162_v25 = vpop.f32.mrb[80].mxu1 }
 0x229   : > { %1755 = vst.msk [vmem:[%s2832_s22 + $0x178] sm:$0xff] %vm1707_vm3, %v1690_v31  ;;  %v1225_v3 = vadd.f32 %v2162_v25, %v2818_v28  ;;  %v1216_v16 = vpop.f32.mrb[81].mxu1 }
 0x22a   : > { %1753 = vst.msk [vmem:[%s2832_s22 + $0x168] sm:$0xff] %vm1707_vm3, %v1688_v19  ;;  %v1217_v46 = vadd.f32 %v2818_v28, %v1216_v16  ;;  %v2163_v24 = vpop.f32.mrb[82].mxu1 }
 0x22b   : > { %v1329_v34 = vmax.f32 %v1225_v3, 0.0  ;;  %v1228_v35 = vadd.f32 %v2163_v24, %v2818_v28  ;;  %v1219_v14 = vpop.f32.mrb[83].mxu1 }
 0x22c   : > { %v1327_v15 = vmax.f32 %v1217_v46, 0.0  ;;  %v1220_v57 = vadd.f32 %v2818_v28, %v1219_v14  ;;  %v3186_v14 = vld [vmem:[#allocation15_spill] sm:$0xff] }
 0x22d   : > { %v1693_v37 = vadd.f32 %v1589_v55, %v1329_v34  ;;  %v1330_v33 = vmax.f32 %v1228_v35, 0.0  ;;  %v1624_v55 = vadd.f32 %v3184_v23, %v2813_v22 }
 0x22e   : > { %v1691_v58 = vadd.f32 %v1581_v56, %v1327_v15  ;;  %v1328_v41 = vmax.f32 %v1220_v57, 0.0  ;;  %v1616_v56 = vadd.f32 %v2813_v22, %v3185_v5  ;;  %v1637_v15 = vadd.f32 %v3186_v14, %v2813_v22 }
 0x22f   : > { %1758 = vst.msk [vmem:[%s2832_s22 + $0x190] sm:$0xff] %vm1707_vm3, %v1693_v37  ;;  %v1694_v17 = vadd.f32 %v1592_v47, %v1330_v33  ;;  %v1629_v47 = vadd.f32 %v2813_v22, %v3187_v30 }
 0x230   : > { %1756 = vst.msk [vmem:[%s2832_s22 + $0x180] sm:$0xff] %vm1707_vm3, %v1691_v58  ;;  %v1692_v26 = vadd.f32 %v1584_v49, %v1328_v41  ;;  %v2166_v59 = vpop.f32.mrb[84].mxu1 }
 0x231   : > { %1759 = vst.msk [vmem:[%s2832_s22 + $0x198] sm:$0xff] %vm1707_vm3, %v1694_v17  ;;  %v1241_v39 = vadd.f32 %v2166_v59, %v2818_v28  ;;  %v1232_v32 = vpop.f32.mrb[85].mxu1 }
 0x232   : > { %1757 = vst.msk [vmem:[%s2832_s22 + $0x188] sm:$0xff] %vm1707_vm3, %v1692_v26  ;;  %v1233_v9 = vadd.f32 %v2818_v28, %v1232_v32  ;;  %v2167_v45 = vpop.f32.mrb[86].mxu1 }
 0x233   : > { %v1333_v61 = vmax.f32 %v1241_v39, 0.0  ;;  %v1244_v8 = vadd.f32 %v2167_v45, %v2818_v28  ;;  %v1235_v36 = vpop.f32.mrb[87].mxu1 }
 0x234   : > { %v1331_v13 = vmax.f32 %v1233_v9, 0.0  ;;  %v1236_v11 = vadd.f32 %v2818_v28, %v1235_v36 }
 0x235   : > { %v1697_v62 = vadd.f32 %v1605_v60, %v1333_v61  ;;  %v1334_v10 = vmax.f32 %v1244_v8, 0.0  ;;  %v1640_v60 = vadd.f32 %v3188_v21, %v2813_v22 }
 0x236   : > { %v1695_v52 = vadd.f32 %v1597_v50, %v1331_v13  ;;  %v1332_v43 = vmax.f32 %v1236_v11, 0.0  ;;  %v1632_v50 = vadd.f32 %v2813_v22, %v3189_v42 }
 0x237   : > { %1762 = vst.msk [vmem:[%s2832_s22 + $0x1b0] sm:$0xff] %vm1707_vm3, %v1697_v62  ;;  %v1698_v0 = vadd.f32 %v1608_v48, %v1334_v10 }
 0x238   : > { %1760 = vst.msk [vmem:[%s2832_s22 + $0x1a0] sm:$0xff] %vm1707_vm3, %v1695_v52  ;;  %v1696_v4 = vadd.f32 %v1600_v63, %v1332_v43  ;;  %v2170_v12 = vpop.f32.mrb[88].mxu1 }
 0x239   : > { %1763 = vst.msk [vmem:[%s2832_s22 + $0x1b8] sm:$0xff] %vm1707_vm3, %v1698_v0  ;;  %v1257_v53 = vadd.f32 %v2170_v12, %v2818_v28  ;;  %v1248_v6 = vpop.f32.mrb[89].mxu1 }
 0x23a   : > { %1761 = vst.msk [vmem:[%s2832_s22 + $0x1a8] sm:$0xff] %vm1707_vm3, %v1696_v4  ;;  %v1249_v27 = vadd.f32 %v2818_v28, %v1248_v6  ;;  %v2171_v51 = vpop.f32.mrb[90].mxu1 }
 0x23b   : > { %v1337_v54 = vmax.f32 %v1257_v53, 0.0  ;;  %v1260_v2 = vadd.f32 %v2171_v51, %v2818_v28  ;;  %v1251_v44 = vpop.f32.mrb[91].mxu1 }
 0x23c   : > { %v1335_v31 = vmax.f32 %v1249_v27, 0.0  ;;  %v1252_v19 = vadd.f32 %v2818_v28, %v1251_v44 }
 0x23d   : > { %v1701_v25 = vadd.f32 %v1621_v18, %v1337_v54  ;;  %v1338_v3 = vmax.f32 %v1260_v2, 0.0 }
 0x23e   : > { %v1699_v16 = vadd.f32 %v1613_v7, %v1335_v31  ;;  %v1336_v46 = vmax.f32 %v1252_v19, 0.0 }
 0x23f   : > { %1766 = vst.msk [vmem:[%s2832_s22 + $0x1d0] sm:$0xff] %vm1707_vm3, %v1701_v25  ;;  %v1702_v24 = vadd.f32 %v1624_v55, %v1338_v3 }
 0x240   : > { %1764 = vst.msk [vmem:[%s2832_s22 + $0x1c0] sm:$0xff] %vm1707_vm3, %v1699_v16  ;;  %v1700_v34 = vadd.f32 %v1616_v56, %v1336_v46  ;;  %v2174_v35 = vpop.f32.mrb[92].mxu1 }
 0x241   : > { %1767 = vst.msk [vmem:[%s2832_s22 + $0x1d8] sm:$0xff] %vm1707_vm3, %v1702_v24  ;;  %v1273_v57 = vadd.f32 %v2174_v35, %v2818_v28  ;;  %v1264_v37 = vpop.f32.mrb[93].mxu1 }
 0x242   : > { %1765 = vst.msk [vmem:[%s2832_s22 + $0x1c8] sm:$0xff] %vm1707_vm3, %v1700_v34  ;;  %v1265_v33 = vadd.f32 %v2818_v28, %v1264_v37  ;;  %v2175_v58 = vpop.f32.mrb[94].mxu1 }
 0x243   : > { %v1341_v20 = vmax.f32 %v1273_v57, 0.0  ;;  %v1276_v49 = vadd.f32 %v2175_v58, %v2818_v28  ;;  %v1267_v41 = vpop.f32.mrb[95].mxu1 }
 0x244   : > { %v1339_v17 = vmax.f32 %v1265_v33, 0.0  ;;  %v1268_v26 = vadd.f32 %v2818_v28, %v1267_v41 }
 0x245   : > { %v1705_v59 = vadd.f32 %v1637_v15, %v1341_v20  ;;  %v1342_v39 = vmax.f32 %v1276_v49, 0.0 }
 0x246   : > { %v1703_v32 = vadd.f32 %v1629_v47, %v1339_v17  ;;  %v1340_v9 = vmax.f32 %v1268_v26, 0.0 }
 0x247   : > { %1770 = vst.msk [vmem:[%s2832_s22 + $0x1f0] sm:$0xff] %vm1707_vm3, %v1705_v59  ;;  %v1706_v45 = vadd.f32 %v1640_v60, %v1342_v39 }
 0x248   : > { %1768 = vst.msk [vmem:[%s2832_s22 + $0x1e0] sm:$0xff] %vm1707_vm3, %v1703_v32  ;;  %v1704_v61 = vadd.f32 %v1632_v50, %v1340_v9 }
 0x249   : > { %1771 = vst.msk [vmem:[%s2832_s22 + $0x1f8] sm:$0xff] %vm1707_vm3, %v1706_v45 }
 0x24a   : > { %1769 = vst.msk [vmem:[%s2832_s22 + $0x1e8] sm:$0xff] %vm1707_vm3, %v1704_v61 }
 0x24b PF: > { %s17_s24 = sadd.s32 1, %s2262_s24  }
 0x24c   : > { %p14_p4 = scmp.ge.s32.totalorder %s17_s24, 4  }
 0x24e   :  { %16 = sbr.rel (!%p14_p4) target bundleno = 1 (0x1), region = 78 }

</bundles_post_ra>
